<compile_context>
chip_gen: v7x
topology: tpu7x:2x2x1
jax: 0.10.0
libtpu: 0.0.40
codegen_flags: <defaults>
</compile_context>

<pallas_src>
import functools

import jax
import jax.numpy as jnp
from jax import lax
from jax.experimental import pallas as pl
from jax.experimental.pallas import tpu as pltpu


def adain_resblock_kernel(x_ref, s_ref, fcw_ref, fcb_ref, w1_ref, b1_ref,
                          w2_ref, b2_ref, out_ref, ypad_ref, col_ref, *, H, W):
    # x_ref:   (1, Cin, HW)             input feature map (HW on lanes)
    # s_ref:   (1, 1, style_dim)        style code
    # fcw_ref: (2*Cin + 2*Cout, style)  fused fc1/fc2 weights  [g1; b1; g2; b2]
    # fcb_ref: (2*Cin + 2*Cout, 1)      fused fc1/fc2 biases
    # w1_ref:  (Cout, 9*Cin)  bf16      conv1 weights, cols = (dh*3+dw)*Cin + ci
    # b1_ref:  (Cout, 1)      f32
    # w2_ref:  (Cout, 9*Cout) bf16      conv2 weights
    # b2_ref:  (Cout, 1)      f32
    # out_ref: (1, Cout, HW)
    # ypad_ref: VMEM (Cmax, HW + 2*(W+1)) f32   flat lane-padded activation stage
    # col_ref:  VMEM (9*Cmax, HW)        bf16   im2col buffer (MXU RHS)
    Cin = x_ref.shape[1]      # (padded) input channel count
    Cout = out_ref.shape[1]   # (padded) output channel count
    HW = H * W
    pad = W + 1               # flat halo width on each side of the activation

    # ---- fused AdaIN affine params: one multiply + lane-reduce for both FCs ----
    h = jnp.sum(fcw_ref[...] * s_ref[0], axis=1, keepdims=True) + fcb_ref[...]
    gamma1 = h[0:Cin]
    beta1 = h[Cin:2 * Cin]
    gamma2 = h[2 * Cin:2 * Cin + Cout]
    beta2 = h[2 * Cin + Cout:]

    # ---- zero the halo strips (unconditional: scratch is per-core and under
    # megacore sharding this core may never see program_id 0; cost is tiny). ----
    ypad_ref[:, 0:pad] = jnp.zeros((ypad_ref.shape[0], pad), jnp.float32)
    ypad_ref[:, pad + HW:] = jnp.zeros((ypad_ref.shape[0], pad), jnp.float32)

    # ---- column-validity masks only; off-image ROW taps read halo zeros and the
    # wrap-around corner elements are killed by these column masks. ----
    wi = lax.broadcasted_iota(jnp.int32, (1, HW), 1) % W
    col_ok = [wi >= 1, None, wi <= W - 2]     # dw = 0, 1, 2

    def adain_lrelu(v, gamma, beta):
        # one-pass instance-norm stats (biased var, eps=1e-5) + affine + LeakyReLU(0.2)
        mean = jnp.mean(v, axis=1, keepdims=True)             # (C, 1) lane reductions
        ex2 = jnp.mean(v * v, axis=1, keepdims=True)
        var = jnp.maximum(ex2 - mean * mean, 0.0)
        y = (1.0 + gamma) * ((v - mean) * lax.rsqrt(var + 1e-5)) + beta
        return jnp.maximum(y, 0.2 * y)

    def conv3x3(c_in, w2d, bias):
        # Activation is already staged in ypad interior.  im2col 9 shifted slices
        # into one bf16 buffer, then ONE MXU matmul with f32 accumulation.
        for dh in range(3):
            for dw in range(3):
                off = (dh - 1) * W + (dw - 1)
                piece = ypad_ref[0:c_in, pad + off:pad + off + HW]   # (c_in, HW) f32
                if col_ok[dw] is not None:
                    piece = jnp.where(col_ok[dw], piece, 0.0)
                tap = dh * 3 + dw
                col_ref[tap * c_in:(tap + 1) * c_in, :] = piece.astype(jnp.bfloat16)
        acc = jnp.dot(w2d, col_ref[0:9 * c_in, :],
                      preferred_element_type=jnp.float32)            # (Cout, HW)
        return acc + bias                                            # bias in epilogue

    x = x_ref[0].astype(jnp.float32)                                  # (Cin, HW)
    ypad_ref[0:Cin, pad:pad + HW] = adain_lrelu(x, gamma1, beta1)     # AdaIN1 + lrelu
    z1 = conv3x3(Cin, w1_ref[...], b1_ref[...])                       # conv1
    ypad_ref[0:Cout, pad:pad + HW] = adain_lrelu(z1, gamma2, beta2)   # AdaIN2 + lrelu
    z2 = conv3x3(Cout, w2_ref[...], b2_ref[...])                      # conv2
    out_ref[0] = z2.astype(out_ref.dtype)                             # lane-dense store


def _round_up(n, m):
    return ((n + m - 1) // m) * m


@jax.jit
def adain_resnet_block_pallas(x, s, fc1_w, fc1_b, conv1_w, conv1_b,
                              fc2_w, fc2_b, conv2_w, conv2_b):
    N, Cin, H, W = x.shape
    Cout = conv1_w.shape[0]
    style_dim = s.shape[1]
    HW = H * W

    # Pad channel counts to a multiple of 16 so gamma/beta sublane splits and the
    # im2col tap stride stay tile-aligned (bf16 sublane packing).  No-op when the
    # model widths are already aligned.
    CH_ALIGN = 16
    Cin_p = _round_up(Cin, CH_ALIGN)
    Cout_p = _round_up(Cout, CH_ALIGN)
    Cmax = max(Cin_p, Cout_p)

    def pad_rows(a, n_to):
        if a.shape[0] == n_to:
            return a
        widths = ((0, n_to - a.shape[0]),) + ((0, 0),) * (a.ndim - 1)
        return jnp.pad(a, widths)

    if Cin_p != Cin:
        x = jnp.pad(x, ((0, 0), (0, Cin_p - Cin), (0, 0), (0, 0)))
    x_flat = x.reshape(N, Cin_p, HW)                 # contiguous reshape, HW on lanes
    s3 = s.reshape(N, 1, style_dim)

    # Fused fc1/fc2 affine block, each gamma/beta group padded to its aligned size.
    fcw = jnp.concatenate([pad_rows(fc1_w[:Cin], Cin_p), pad_rows(fc1_w[Cin:], Cin_p),
                           pad_rows(fc2_w[:Cout], Cout_p), pad_rows(fc2_w[Cout:], Cout_p)],
                          axis=0).astype(jnp.float32)
    fcb = jnp.concatenate([pad_rows(fc1_b[:Cin], Cin_p), pad_rows(fc1_b[Cin:], Cin_p),
                           pad_rows(fc2_b[:Cout], Cout_p), pad_rows(fc2_b[Cout:], Cout_p)],
                          axis=0)[:, None].astype(jnp.float32)

    def conv_w_to_2d(w, co_p, ci_p):
        # (Cout, Cin, 3, 3) -> zero-pad channels -> (Cout_p, 9*Cin_p), tap-major cols.
        w = jnp.pad(w, ((0, co_p - w.shape[0]), (0, ci_p - w.shape[1]), (0, 0), (0, 0)))
        return jnp.transpose(w, (0, 2, 3, 1)).reshape(co_p, 9 * ci_p).astype(jnp.bfloat16)

    w1 = conv_w_to_2d(conv1_w, Cout_p, Cin_p)
    w2 = conv_w_to_2d(conv2_w, Cout_p, Cout_p)
    cb1 = pad_rows(conv1_b, Cout_p)[:, None].astype(jnp.float32)
    cb2 = pad_rows(conv2_b, Cout_p)[:, None].astype(jnp.float32)

    # Explicit scoped-VMEM budget: defaults (16 MiB v5e / 32 MiB v6e+) are too small
    # at production channel/spatial sizes.
    pad_lanes = 2 * (W + 1)
    itemsize = jnp.dtype(x.dtype).itemsize
    vmem_bytes = (
        2 * (Cin_p + Cout_p) * HW * itemsize          # double-buffered x / out blocks
        + 2 * style_dim * 4                           # style block
        + (fcw.size + fcb.size + cb1.size + cb2.size) * 4
        + (w1.size + w2.size) * 2                     # single-buffered bf16 weights
        + Cmax * (HW + pad_lanes) * 4                 # ypad scratch (f32)
        + 9 * Cmax * HW * 2                           # im2col scratch (bf16)
        + 6 * Cmax * HW * 4                           # headroom for f32 compiler temps
    )
    vmem_limit = int(min(128 * 1024 * 1024, max(32 * 1024 * 1024, int(vmem_bytes * 1.25))))

    def const2d(shape):
        # Constant operands: same block every step -> single-buffer them.
        return pl.BlockSpec(shape, lambda n: (0, 0), pipeline_mode=pl.Buffered(1))

    kernel = functools.partial(adain_resblock_kernel, H=H, W=W)

    out_flat = pl.pallas_call(
        kernel,
        out_shape=jax.ShapeDtypeStruct((N, Cout_p, HW), x.dtype),
        grid_spec=pltpu.PrefetchScalarGridSpec(
            num_scalar_prefetch=0,
            grid=(N,),
            in_specs=[
                pl.BlockSpec((1, Cin_p, HW), lambda n: (n, 0, 0)),
                pl.BlockSpec((1, 1, style_dim), lambda n: (n, 0, 0)),
                const2d((2 * (Cin_p + Cout_p), style_dim)),
                const2d((2 * (Cin_p + Cout_p), 1)),
                const2d((Cout_p, 9 * Cin_p)),
                const2d((Cout_p, 1)),
                const2d((Cout_p, 9 * Cout_p)),
                const2d((Cout_p, 1)),
            ],
            out_specs=pl.BlockSpec((1, Cout_p, HW), lambda n: (n, 0, 0)),
            scratch_shapes=[
                pltpu.VMEM((Cmax, HW + pad_lanes), jnp.float32),   # flat padded activation
                pltpu.VMEM((9 * Cmax, HW), jnp.bfloat16),          # im2col buffer (bf16)
            ],
        ),
        compiler_params=pltpu.CompilerParams(
            dimension_semantics=("parallel",),        # shard batch across cores on v7x
            vmem_limit_bytes=vmem_limit),
    )(x_flat, s3, fcw, fcb, w1, cb1, w2, cb2)

    return out_flat[:, :Cout, :].reshape(N, Cout, H, W)


def adain_resnet_block_reference(x, s, fc1_w, fc1_b, conv1_w, conv1_b,
                                 fc2_w, fc2_b, conv2_w, conv2_b):
    # Pure-JAX reference mirroring the PyTorch forward (NCHW, f32, high precision).
    def adain(v, fw, fb):
        c = v.shape[1]
        h = jnp.matmul(s, fw.T, precision=lax.Precision.HIGHEST) + fb   # (N, 2C)
        gamma = h[:, :c][:, :, None, None]
        beta = h[:, c:][:, :, None, None]
        mean = jnp.mean(v, axis=(2, 3), keepdims=True)
        var = jnp.var(v, axis=(2, 3), keepdims=True)                    # biased
        vn = (v - mean) * lax.rsqrt(var + 1e-5)
        return (1.0 + gamma) * vn + beta

    def lrelu(v):
        return jnp.where(v > 0, v, 0.2 * v)

    def conv(v, w, b):
        y = lax.conv_general_dilated(
            v, w, window_strides=(1, 1), padding="SAME",
            dimension_numbers=("NCHW", "OIHW", "NCHW"),
            precision=lax.Precision.HIGHEST)
        return y + b[None, :, None, None]

    y = conv(lrelu(adain(x, fc1_w, fc1_b)), conv1_w, conv1_b)
    y = conv(lrelu(adain(y, fc2_w, fc2_b)), conv2_w, conv2_b)
    return y


if __name__ == "__main__":
    # AdaINResnetBlock(dim_in=4, dim_out=4, style_dim=8); x: (2, 4, 16, 16), s: (2, 8)
    N, Cin, Cout, H, W, style_dim = 2, 4, 4, 16, 16, 8

    key = jax.random.PRNGKey(0)
    ks = jax.random.split(key, 10)

    def bf16_exact(a):
        # keep conv weights exactly bf16-representable so the bf16 MXU path can be
        # validated against the f32 reference with a tight bound
        return a.astype(jnp.bfloat16).astype(jnp.float32)

    x = jax.random.normal(ks[0], (N, Cin, H, W), jnp.float32)
    s = jax.random.normal(ks[1], (N, style_dim), jnp.float32)

    fc1_w = 0.1 * jax.random.normal(ks[2], (2 * Cin, style_dim), jnp.float32)
    fc1_b = 0.1 * jax.random.normal(ks[3], (2 * Cin,), jnp.float32)
    conv1_w = bf16_exact(0.05 * jax.random.normal(ks[4], (Cout, Cin, 3, 3), jnp.float32))
    conv1_b = 0.1 * jax.random.normal(ks[5], (Cout,), jnp.float32)
    fc2_w = 0.1 * jax.random.normal(ks[6], (2 * Cout, style_dim), jnp.float32)
    fc2_b = 0.1 * jax.random.normal(ks[7], (2 * Cout,), jnp.float32)
    conv2_w = bf16_exact(0.05 * jax.random.normal(ks[8], (Cout, Cout, 3, 3), jnp.float32))
    conv2_b = 0.1 * jax.random.normal(ks[9], (Cout,), jnp.float32)

    out = adain_resnet_block_pallas(x, s, fc1_w, fc1_b, conv1_w, conv1_b,
                                    fc2_w, fc2_b, conv2_w, conv2_b)
    out = jax.block_until_ready(out)

    ref = adain_resnet_block_reference(x, s, fc1_w, fc1_b, conv1_w, conv1_b,
                                       fc2_w, fc2_b, conv2_w, conv2_b)
    # bf16 im2col activations are the dominant error source; tolerance left at 3e-2.
    err = float(jnp.max(jnp.abs(out - ref)))
    assert out.shape == (N, Cout, H, W), out.shape
    assert err < 3e-2, f"max abs err {err}"

    print("KERNEL_OK")
</pallas_src>

<mosaic_0001>
module attributes {stable_mosaic.version = 11 : i64} {
  func.func @adain_resblock_kernel(%arg0: i32, %arg1: memref<1x16x256xf32, #tpu.memory_space<vmem>>, %arg2: memref<1x1x8xf32, #tpu.memory_space<vmem>>, %arg3: memref<64x8xf32, #tpu.memory_space<vmem>>, %arg4: memref<64x1xf32, #tpu.memory_space<vmem>>, %arg5: memref<16x144xbf16, #tpu.memory_space<vmem>>, %arg6: memref<16x1xf32, #tpu.memory_space<vmem>>, %arg7: memref<16x144xbf16, #tpu.memory_space<vmem>>, %arg8: memref<16x1xf32, #tpu.memory_space<vmem>>, %arg9: memref<1x16x256xf32, #tpu.memory_space<vmem>>, %arg10: memref<16x290xf32, #tpu.memory_space<vmem>>, %arg11: memref<144x256xbf16, #tpu.memory_space<vmem>>) attributes {dimension_semantics = [#tpu.dimension_semantics<parallel>], iteration_bounds = array<i64: 2>, scalar_prefetch = 0 : i64, scratch_operands = 2 : i64, tpu.core_type = #tpu.core_type<tc>, window_params = [{transform_indices = @transform_0, window_bounds = array<i64: 1, 16, 256>}, {transform_indices = @transform_1, window_bounds = array<i64: 1, 1, 8>}, {pipeline_mode = #tpu.pipeline_mode<synchronous>, transform_indices = @transform_2, window_bounds = array<i64: 64, 8>}, {pipeline_mode = #tpu.pipeline_mode<synchronous>, transform_indices = @transform_3, window_bounds = array<i64: 64, 1>}, {pipeline_mode = #tpu.pipeline_mode<synchronous>, transform_indices = @transform_4, window_bounds = array<i64: 16, 144>}, {pipeline_mode = #tpu.pipeline_mode<synchronous>, transform_indices = @transform_5, window_bounds = array<i64: 16, 1>}, {pipeline_mode = #tpu.pipeline_mode<synchronous>, transform_indices = @transform_6, window_bounds = array<i64: 16, 144>}, {pipeline_mode = #tpu.pipeline_mode<synchronous>, transform_indices = @transform_7, window_bounds = array<i64: 16, 1>}, {transform_indices = @transform_8, window_bounds = array<i64: 1, 16, 256>}]} {
    %c0 = arith.constant 0 : index
    %c0_0 = arith.constant 0 : index
    %0 = vector.load %arg3[%c0, %c0_0] : memref<64x8xf32, #tpu.memory_space<vmem>>, vector<64x8xf32>
    %c0_1 = arith.constant 0 : index
    %c0_2 = arith.constant 0 : index
    %c0_3 = arith.constant 0 : index
    %1 = vector.load %arg2[%c0_1, %c0_2, %c0_3] : memref<1x1x8xf32, #tpu.memory_space<vmem>>, vector<1x1x8xf32>
    %2 = vector.shape_cast %1 : vector<1x1x8xf32> to vector<1x8xf32>
    %3 = vector.broadcast %2 : vector<1x8xf32> to vector<64x8xf32>
    %4 = arith.mulf %0, %3 : vector<64x8xf32>
    %cst = arith.constant dense<0.000000e+00> : vector<64xf32>
    %5 = vector.multi_reduction <add>, %4, %cst [1] : vector<64x8xf32> to vector<64xf32>
    %6 = vector.shape_cast %5 : vector<64xf32> to vector<64x1xf32>
    %c0_4 = arith.constant 0 : index
    %c0_5 = arith.constant 0 : index
    %7 = vector.load %arg4[%c0_4, %c0_5] : memref<64x1xf32, #tpu.memory_space<vmem>>, vector<64x1xf32>
    %8 = arith.addf %6, %7 : vector<64x1xf32>
    %9 = vector.extract_strided_slice %8 {offsets = [0, 0], sizes = [16, 1], strides = [1, 1]} : vector<64x1xf32> to vector<16x1xf32>
    %10 = vector.extract_strided_slice %8 {offsets = [16, 0], sizes = [16, 1], strides = [1, 1]} : vector<64x1xf32> to vector<16x1xf32>
    %11 = vector.extract_strided_slice %8 {offsets = [32, 0], sizes = [16, 1], strides = [1, 1]} : vector<64x1xf32> to vector<16x1xf32>
    %12 = vector.extract_strided_slice %8 {offsets = [48, 0], sizes = [16, 1], strides = [1, 1]} : vector<64x1xf32> to vector<16x1xf32>
    %cst_6 = arith.constant 0.000000e+00 : f32
    %13 = vector.broadcast %cst_6 : f32 to vector<16x17xf32>
    %c0_7 = arith.constant 0 : index
    %c0_8 = arith.constant 0 : index
    %14 = vector.load %arg10[%c0_7, %c0_8] : memref<16x290xf32, #tpu.memory_space<vmem>>, vector<16x17xf32>
    tpu.vector_store %arg10[%c0_7, %c0_8], %13 {strides = array<i32>} : memref<16x290xf32, #tpu.memory_space<vmem>>, vector<16x17xf32>,
    %cst_9 = arith.constant 0.000000e+00 : f32
    %15 = vector.broadcast %cst_9 : f32 to vector<16x17xf32>
    %c0_10 = arith.constant 0 : index
    %c273 = arith.constant 273 : index
    %16 = vector.load %arg10[%c0_10, %c273] : memref<16x290xf32, #tpu.memory_space<vmem>>, vector<16x17xf32>
    tpu.vector_store %arg10[%c0_10, %c273], %15 {strides = array<i32>} : memref<16x290xf32, #tpu.memory_space<vmem>>, vector<16x17xf32>,
    %17 = tpu.iota {dimensions = array<i32: 1>} : vector<1x256xi32>
    %c16_i32 = arith.constant 16 : i32
    %c0_i32 = arith.constant 0 : i32
    %18 = arith.cmpi eq, %c16_i32, %c0_i32 : i32
    %c1_i32 = arith.constant 1 : i32
    %19 = arith.select %18, %c1_i32, %c16_i32 : i32
    %20 = vector.broadcast %19 : i32 to vector<1x256xi32>
    %21 = arith.remsi %17, %20 : vector<1x256xi32>
    %c0_i32_11 = arith.constant 0 : i32
    %22 = vector.broadcast %c0_i32_11 : i32 to vector<1x256xi32>
    %23 = arith.cmpi ne, %21, %22 : vector<1x256xi32>
    %c0_i32_12 = arith.constant 0 : i32
    %24 = vector.broadcast %c0_i32_12 : i32 to vector<1x256xi32>
    %25 = arith.cmpi slt, %21, %24 : vector<1x256xi32>
    %c0_i32_13 = arith.constant 0 : i32
    %26 = arith.cmpi slt, %19, %c0_i32_13 : i32
    %27 = vector.broadcast %26 : i1 to vector<1x256xi1>
    %28 = vector.broadcast %27 : vector<1x256xi1> to vector<1x256xi1>
    %29 = arith.xori %25, %28 : vector<1x256xi1>
    %30 = arith.andi %29, %23 : vector<1x256xi1>
    %31 = vector.broadcast %19 : i32 to vector<1x256xi32>
    %32 = arith.addi %21, %31 : vector<1x256xi32>
    %33 = arith.select %30, %32, %21 : vector<1x256xi1>, vector<1x256xi32>
    %c1_i32_14 = arith.constant 1 : i32
    %34 = vector.broadcast %c1_i32_14 : i32 to vector<1x256xi32>
    %35 = arith.cmpi sge, %33, %34 : vector<1x256xi32>
    %c14_i32 = arith.constant 14 : i32
    %36 = vector.broadcast %c14_i32 : i32 to vector<1x256xi32>
    %37 = arith.cmpi sle, %33, %36 : vector<1x256xi32>
    %c0_15 = arith.constant 0 : index
    %c0_16 = arith.constant 0 : index
    %c0_17 = arith.constant 0 : index
    %38 = vector.load %arg1[%c0_15, %c0_16, %c0_17] : memref<1x16x256xf32, #tpu.memory_space<vmem>>, vector<1x16x256xf32>
    %39 = vector.shape_cast %38 : vector<1x16x256xf32> to vector<16x256xf32>
    %cst_18 = arith.constant dense<0.000000e+00> : vector<16xf32>
    %40 = vector.multi_reduction <add>, %39, %cst_18 [1] : vector<16x256xf32> to vector<16xf32>
    %41 = vector.shape_cast %40 : vector<16xf32> to vector<16x1xf32>
    %cst_19 = arith.constant 2.560000e+02 : f32
    %42 = vector.broadcast %cst_19 : f32 to vector<16x1xf32>
    %43 = arith.divf %41, %42 : vector<16x1xf32>
    %44 = arith.mulf %39, %39 : vector<16x256xf32>
    %cst_20 = arith.constant dense<0.000000e+00> : vector<16xf32>
    %45 = vector.multi_reduction <add>, %44, %cst_20 [1] : vector<16x256xf32> to vector<16xf32>
    %46 = vector.shape_cast %45 : vector<16xf32> to vector<16x1xf32>
    %cst_21 = arith.constant 2.560000e+02 : f32
    %47 = vector.broadcast %cst_21 : f32 to vector<16x1xf32>
    %48 = arith.divf %46, %47 : vector<16x1xf32>
    %49 = arith.mulf %43, %43 : vector<16x1xf32>
    %50 = arith.subf %48, %49 : vector<16x1xf32>
    %cst_22 = arith.constant 0.000000e+00 : f32
    %51 = vector.broadcast %cst_22 : f32 to vector<16x1xf32>
    %52 = arith.maximumf %50, %51 : vector<16x1xf32>
    %cst_23 = arith.constant 1.000000e+00 : f32
    %53 = vector.broadcast %cst_23 : f32 to vector<16x1xf32>
    %54 = arith.addf %53, %9 : vector<16x1xf32>
    %55 = vector.broadcast %43 : vector<16x1xf32> to vector<16x256xf32>
    %56 = arith.subf %39, %55 : vector<16x256xf32>
    %cst_24 = arith.constant 9.99999974E-6 : f32
    %57 = vector.broadcast %cst_24 : f32 to vector<16x1xf32>
    %58 = arith.addf %52, %57 : vector<16x1xf32>
    %59 = math.rsqrt %58 : vector<16x1xf32>
    %60 = vector.broadcast %59 : vector<16x1xf32> to vector<16x256xf32>
    %61 = arith.mulf %56, %60 : vector<16x256xf32>
    %62 = vector.broadcast %54 : vector<16x1xf32> to vector<16x256xf32>
    %63 = arith.mulf %62, %61 : vector<16x256xf32>
    %64 = vector.broadcast %10 : vector<16x1xf32> to vector<16x256xf32>
    %65 = arith.addf %63, %64 : vector<16x256xf32>
    %cst_25 = arith.constant 2.000000e-01 : f32
    %66 = vector.broadcast %cst_25 : f32 to vector<16x256xf32>
    %67 = arith.mulf %66, %65 : vector<16x256xf32>
    %68 = arith.maximumf %65, %67 : vector<16x256xf32>
    %c0_26 = arith.constant 0 : index
    %c17 = arith.constant 17 : index
    %69 = vector.load %arg10[%c0_26, %c17] : memref<16x290xf32, #tpu.memory_space<vmem>>, vector<16x256xf32>
    tpu.vector_store %arg10[%c0_26, %c17], %68 {strides = array<i32>} : memref<16x290xf32, #tpu.memory_space<vmem>>, vector<16x256xf32>,
    %c0_27 = arith.constant 0 : index
    %c0_28 = arith.constant 0 : index
    %70 = vector.load %arg5[%c0_27, %c0_28] : memref<16x144xbf16, #tpu.memory_space<vmem>>, vector<16x144xbf16>
    %c0_29 = arith.constant 0 : index
    %c0_30 = arith.constant 0 : index
    %71 = vector.load %arg6[%c0_29, %c0_30] : memref<16x1xf32, #tpu.memory_space<vmem>>, vector<16x1xf32>
    %c0_31 = arith.constant 0 : index
    %c0_32 = arith.constant 0 : index
    %72 = vector.load %arg10[%c0_31, %c0_32] : memref<16x290xf32, #tpu.memory_space<vmem>>, vector<16x256xf32>
    %cst_33 = arith.constant 0.000000e+00 : f32
    %73 = vector.shape_cast %35 : vector<1x256xi1> to vector<1x256xi1>
    %74 = vector.broadcast %73 : vector<1x256xi1> to vector<16x256xi1>
    %75 = vector.broadcast %cst_33 : f32 to vector<16x256xf32>
    %76 = arith.select %74, %72, %75 : vector<16x256xi1>, vector<16x256xf32>
    %77 = arith.truncf %76 : vector<16x256xf32> to vector<16x256xbf16>
    %c0_34 = arith.constant 0 : index
    %c0_35 = arith.constant 0 : index
    %78 = vector.load %arg11[%c0_34, %c0_35] : memref<144x256xbf16, #tpu.memory_space<vmem>>, vector<16x256xbf16>
    tpu.vector_store %arg11[%c0_34, %c0_35], %77 {strides = array<i32>} : memref<144x256xbf16, #tpu.memory_space<vmem>>, vector<16x256xbf16>,
    %c0_36 = arith.constant 0 : index
    %c1 = arith.constant 1 : index
    %79 = vector.load %arg10[%c0_36, %c1] : memref<16x290xf32, #tpu.memory_space<vmem>>, vector<16x256xf32>
    %80 = arith.truncf %79 : vector<16x256xf32> to vector<16x256xbf16>
    %c16 = arith.constant 16 : index
    %c0_37 = arith.constant 0 : index
    %81 = vector.load %arg11[%c16, %c0_37] : memref<144x256xbf16, #tpu.memory_space<vmem>>, vector<16x256xbf16>
    tpu.vector_store %arg11[%c16, %c0_37], %80 {strides = array<i32>} : memref<144x256xbf16, #tpu.memory_space<vmem>>, vector<16x256xbf16>,
    %c0_38 = arith.constant 0 : index
    %c2 = arith.constant 2 : index
    %82 = vector.load %arg10[%c0_38, %c2] : memref<16x290xf32, #tpu.memory_space<vmem>>, vector<16x256xf32>
    %cst_39 = arith.constant 0.000000e+00 : f32
    %83 = vector.shape_cast %37 : vector<1x256xi1> to vector<1x256xi1>
    %84 = vector.broadcast %83 : vector<1x256xi1> to vector<16x256xi1>
    %85 = vector.broadcast %cst_39 : f32 to vector<16x256xf32>
    %86 = arith.select %84, %82, %85 : vector<16x256xi1>, vector<16x256xf32>
    %87 = arith.truncf %86 : vector<16x256xf32> to vector<16x256xbf16>
    %c32 = arith.constant 32 : index
    %c0_40 = arith.constant 0 : index
    %88 = vector.load %arg11[%c32, %c0_40] : memref<144x256xbf16, #tpu.memory_space<vmem>>, vector<16x256xbf16>
    tpu.vector_store %arg11[%c32, %c0_40], %87 {strides = array<i32>} : memref<144x256xbf16, #tpu.memory_space<vmem>>, vector<16x256xbf16>,
    %c0_41 = arith.constant 0 : index
    %c16_42 = arith.constant 16 : index
    %89 = vector.load %arg10[%c0_41, %c16_42] : memref<16x290xf32, #tpu.memory_space<vmem>>, vector<16x256xf32>
    %cst_43 = arith.constant 0.000000e+00 : f32
    %90 = vector.shape_cast %35 : vector<1x256xi1> to vector<1x256xi1>
    %91 = vector.broadcast %90 : vector<1x256xi1> to vector<16x256xi1>
    %92 = vector.broadcast %cst_43 : f32 to vector<16x256xf32>
    %93 = arith.select %91, %89, %92 : vector<16x256xi1>, vector<16x256xf32>
    %94 = arith.truncf %93 : vector<16x256xf32> to vector<16x256xbf16>
    %c48 = arith.constant 48 : index
    %c0_44 = arith.constant 0 : index
    %95 = vector.load %arg11[%c48, %c0_44] : memref<144x256xbf16, #tpu.memory_space<vmem>>, vector<16x256xbf16>
    tpu.vector_store %arg11[%c48, %c0_44], %94 {strides = array<i32>} : memref<144x256xbf16, #tpu.memory_space<vmem>>, vector<16x256xbf16>,
    %c0_45 = arith.constant 0 : index
    %c17_46 = arith.constant 17 : index
    %96 = vector.load %arg10[%c0_45, %c17_46] : memref<16x290xf32, #tpu.memory_space<vmem>>, vector<16x256xf32>
    %97 = arith.truncf %96 : vector<16x256xf32> to vector<16x256xbf16>
    %c64 = arith.constant 64 : index
    %c0_47 = arith.constant 0 : index
    %98 = vector.load %arg11[%c64, %c0_47] : memref<144x256xbf16, #tpu.memory_space<vmem>>, vector<16x256xbf16>
    tpu.vector_store %arg11[%c64, %c0_47], %97 {strides = array<i32>} : memref<144x256xbf16, #tpu.memory_space<vmem>>, vector<16x256xbf16>,
    %c0_48 = arith.constant 0 : index
    %c18 = arith.constant 18 : index
    %99 = vector.load %arg10[%c0_48, %c18] : memref<16x290xf32, #tpu.memory_space<vmem>>, vector<16x256xf32>
    %cst_49 = arith.constant 0.000000e+00 : f32
    %100 = vector.shape_cast %37 : vector<1x256xi1> to vector<1x256xi1>
    %101 = vector.broadcast %100 : vector<1x256xi1> to vector<16x256xi1>
    %102 = vector.broadcast %cst_49 : f32 to vector<16x256xf32>
    %103 = arith.select %101, %99, %102 : vector<16x256xi1>, vector<16x256xf32>
    %104 = arith.truncf %103 : vector<16x256xf32> to vector<16x256xbf16>
    %c80 = arith.constant 80 : index
    %c0_50 = arith.constant 0 : index
    %105 = vector.load %arg11[%c80, %c0_50] : memref<144x256xbf16, #tpu.memory_space<vmem>>, vector<16x256xbf16>
    tpu.vector_store %arg11[%c80, %c0_50], %104 {strides = array<i32>} : memref<144x256xbf16, #tpu.memory_space<vmem>>, vector<16x256xbf16>,
    %c0_51 = arith.constant 0 : index
    %c32_52 = arith.constant 32 : index
    %106 = vector.load %arg10[%c0_51, %c32_52] : memref<16x290xf32, #tpu.memory_space<vmem>>, vector<16x256xf32>
    %cst_53 = arith.constant 0.000000e+00 : f32
    %107 = vector.shape_cast %35 : vector<1x256xi1> to vector<1x256xi1>
    %108 = vector.broadcast %107 : vector<1x256xi1> to vector<16x256xi1>
    %109 = vector.broadcast %cst_53 : f32 to vector<16x256xf32>
    %110 = arith.select %108, %106, %109 : vector<16x256xi1>, vector<16x256xf32>
    %111 = arith.truncf %110 : vector<16x256xf32> to vector<16x256xbf16>
    %c96 = arith.constant 96 : index
    %c0_54 = arith.constant 0 : index
    %112 = vector.load %arg11[%c96, %c0_54] : memref<144x256xbf16, #tpu.memory_space<vmem>>, vector<16x256xbf16>
    tpu.vector_store %arg11[%c96, %c0_54], %111 {strides = array<i32>} : memref<144x256xbf16, #tpu.memory_space<vmem>>, vector<16x256xbf16>,
    %c0_55 = arith.constant 0 : index
    %c33 = arith.constant 33 : index
    %113 = vector.load %arg10[%c0_55, %c33] : memref<16x290xf32, #tpu.memory_space<vmem>>, vector<16x256xf32>
    %114 = arith.truncf %113 : vector<16x256xf32> to vector<16x256xbf16>
    %c112 = arith.constant 112 : index
    %c0_56 = arith.constant 0 : index
    %115 = vector.load %arg11[%c112, %c0_56] : memref<144x256xbf16, #tpu.memory_space<vmem>>, vector<16x256xbf16>
    tpu.vector_store %arg11[%c112, %c0_56], %114 {strides = array<i32>} : memref<144x256xbf16, #tpu.memory_space<vmem>>, vector<16x256xbf16>,
    %c0_57 = arith.constant 0 : index
    %c34 = arith.constant 34 : index
    %116 = vector.load %arg10[%c0_57, %c34] : memref<16x290xf32, #tpu.memory_space<vmem>>, vector<16x256xf32>
    %cst_58 = arith.constant 0.000000e+00 : f32
    %117 = vector.shape_cast %37 : vector<1x256xi1> to vector<1x256xi1>
    %118 = vector.broadcast %117 : vector<1x256xi1> to vector<16x256xi1>
    %119 = vector.broadcast %cst_58 : f32 to vector<16x256xf32>
    %120 = arith.select %118, %116, %119 : vector<16x256xi1>, vector<16x256xf32>
    %121 = arith.truncf %120 : vector<16x256xf32> to vector<16x256xbf16>
    %c128 = arith.constant 128 : index
    %c0_59 = arith.constant 0 : index
    %122 = vector.load %arg11[%c128, %c0_59] : memref<144x256xbf16, #tpu.memory_space<vmem>>, vector<16x256xbf16>
    tpu.vector_store %arg11[%c128, %c0_59], %121 {strides = array<i32>} : memref<144x256xbf16, #tpu.memory_space<vmem>>, vector<16x256xbf16>,
    %c0_60 = arith.constant 0 : index
    %c0_61 = arith.constant 0 : index
    %123 = vector.load %arg11[%c0_60, %c0_61] : memref<144x256xbf16, #tpu.memory_space<vmem>>, vector<144x256xbf16>
    %cst_62 = arith.constant dense<0.000000e+00> : vector<16x256xf32>
    %124 = tpu.matmul %70, %123, %cst_62 {dimension_numbers = #tpu.dot_dimension_numbers<[1], [0], [0], [1], [0, 0, 1, 1], [], []>} : vector<16x144xbf16>, vector<144x256xbf16>, vector<16x256xf32> -> vector<16x256xf32>
    %125 = vector.broadcast %71 : vector<16x1xf32> to vector<16x256xf32>
    %126 = arith.addf %124, %125 : vector<16x256xf32>
    %cst_63 = arith.constant dense<0.000000e+00> : vector<16xf32>
    %127 = vector.multi_reduction <add>, %126, %cst_63 [1] : vector<16x256xf32> to vector<16xf32>
    %128 = vector.shape_cast %127 : vector<16xf32> to vector<16x1xf32>
    %cst_64 = arith.constant 2.560000e+02 : f32
    %129 = vector.broadcast %cst_64 : f32 to vector<16x1xf32>
    %130 = arith.divf %128, %129 : vector<16x1xf32>
    %131 = arith.mulf %126, %126 : vector<16x256xf32>
    %cst_65 = arith.constant dense<0.000000e+00> : vector<16xf32>
    %132 = vector.multi_reduction <add>, %131, %cst_65 [1] : vector<16x256xf32> to vector<16xf32>
    %133 = vector.shape_cast %132 : vector<16xf32> to vector<16x1xf32>
    %cst_66 = arith.constant 2.560000e+02 : f32
    %134 = vector.broadcast %cst_66 : f32 to vector<16x1xf32>
    %135 = arith.divf %133, %134 : vector<16x1xf32>
    %136 = arith.mulf %130, %130 : vector<16x1xf32>
    %137 = arith.subf %135, %136 : vector<16x1xf32>
    %cst_67 = arith.constant 0.000000e+00 : f32
    %138 = vector.broadcast %cst_67 : f32 to vector<16x1xf32>
    %139 = arith.maximumf %137, %138 : vector<16x1xf32>
    %cst_68 = arith.constant 1.000000e+00 : f32
    %140 = vector.broadcast %cst_68 : f32 to vector<16x1xf32>
    %141 = arith.addf %140, %11 : vector<16x1xf32>
    %142 = vector.broadcast %130 : vector<16x1xf32> to vector<16x256xf32>
    %143 = arith.subf %126, %142 : vector<16x256xf32>
    %cst_69 = arith.constant 9.99999974E-6 : f32
    %144 = vector.broadcast %cst_69 : f32 to vector<16x1xf32>
    %145 = arith.addf %139, %144 : vector<16x1xf32>
    %146 = math.rsqrt %145 : vector<16x1xf32>
    %147 = vector.broadcast %146 : vector<16x1xf32> to vector<16x256xf32>
    %148 = arith.mulf %143, %147 : vector<16x256xf32>
    %149 = vector.broadcast %141 : vector<16x1xf32> to vector<16x256xf32>
    %150 = arith.mulf %149, %148 : vector<16x256xf32>
    %151 = vector.broadcast %12 : vector<16x1xf32> to vector<16x256xf32>
    %152 = arith.addf %150, %151 : vector<16x256xf32>
    %cst_70 = arith.constant 2.000000e-01 : f32
    %153 = vector.broadcast %cst_70 : f32 to vector<16x256xf32>
    %154 = arith.mulf %153, %152 : vector<16x256xf32>
    %155 = arith.maximumf %152, %154 : vector<16x256xf32>
    %c0_71 = arith.constant 0 : index
    %c17_72 = arith.constant 17 : index
    %156 = vector.load %arg10[%c0_71, %c17_72] : memref<16x290xf32, #tpu.memory_space<vmem>>, vector<16x256xf32>
    tpu.vector_store %arg10[%c0_71, %c17_72], %155 {strides = array<i32>} : memref<16x290xf32, #tpu.memory_space<vmem>>, vector<16x256xf32>,
    %c0_73 = arith.constant 0 : index
    %c0_74 = arith.constant 0 : index
    %157 = vector.load %arg7[%c0_73, %c0_74] : memref<16x144xbf16, #tpu.memory_space<vmem>>, vector<16x144xbf16>
    %c0_75 = arith.constant 0 : index
    %c0_76 = arith.constant 0 : index
    %158 = vector.load %arg8[%c0_75, %c0_76] : memref<16x1xf32, #tpu.memory_space<vmem>>, vector<16x1xf32>
    %c0_77 = arith.constant 0 : index
    %c0_78 = arith.constant 0 : index
    %159 = vector.load %arg10[%c0_77, %c0_78] : memref<16x290xf32, #tpu.memory_space<vmem>>, vector<16x256xf32>
    %cst_79 = arith.constant 0.000000e+00 : f32
    %160 = vector.shape_cast %35 : vector<1x256xi1> to vector<1x256xi1>
    %161 = vector.broadcast %160 : vector<1x256xi1> to vector<16x256xi1>
    %162 = vector.broadcast %cst_79 : f32 to vector<16x256xf32>
    %163 = arith.select %161, %159, %162 : vector<16x256xi1>, vector<16x256xf32>
    %164 = arith.truncf %163 : vector<16x256xf32> to vector<16x256xbf16>
    %c0_80 = arith.constant 0 : index
    %c0_81 = arith.constant 0 : index
    %165 = vector.load %arg11[%c0_80, %c0_81] : memref<144x256xbf16, #tpu.memory_space<vmem>>, vector<16x256xbf16>
    tpu.vector_store %arg11[%c0_80, %c0_81], %164 {strides = array<i32>} : memref<144x256xbf16, #tpu.memory_space<vmem>>, vector<16x256xbf16>,
    %c0_82 = arith.constant 0 : index
    %c1_83 = arith.constant 1 : index
    %166 = vector.load %arg10[%c0_82, %c1_83] : memref<16x290xf32, #tpu.memory_space<vmem>>, vector<16x256xf32>
    %167 = arith.truncf %166 : vector<16x256xf32> to vector<16x256xbf16>
    %c16_84 = arith.constant 16 : index
    %c0_85 = arith.constant 0 : index
    %168 = vector.load %arg11[%c16_84, %c0_85] : memref<144x256xbf16, #tpu.memory_space<vmem>>, vector<16x256xbf16>
    tpu.vector_store %arg11[%c16_84, %c0_85], %167 {strides = array<i32>} : memref<144x256xbf16, #tpu.memory_space<vmem>>, vector<16x256xbf16>,
    %c0_86 = arith.constant 0 : index
    %c2_87 = arith.constant 2 : index
    %169 = vector.load %arg10[%c0_86, %c2_87] : memref<16x290xf32, #tpu.memory_space<vmem>>, vector<16x256xf32>
    %cst_88 = arith.constant 0.000000e+00 : f32
    %170 = vector.shape_cast %37 : vector<1x256xi1> to vector<1x256xi1>
    %171 = vector.broadcast %170 : vector<1x256xi1> to vector<16x256xi1>
    %172 = vector.broadcast %cst_88 : f32 to vector<16x256xf32>
    %173 = arith.select %171, %169, %172 : vector<16x256xi1>, vector<16x256xf32>
    %174 = arith.truncf %173 : vector<16x256xf32> to vector<16x256xbf16>
    %c32_89 = arith.constant 32 : index
    %c0_90 = arith.constant 0 : index
    %175 = vector.load %arg11[%c32_89, %c0_90] : memref<144x256xbf16, #tpu.memory_space<vmem>>, vector<16x256xbf16>
    tpu.vector_store %arg11[%c32_89, %c0_90], %174 {strides = array<i32>} : memref<144x256xbf16, #tpu.memory_space<vmem>>, vector<16x256xbf16>,
    %c0_91 = arith.constant 0 : index
    %c16_92 = arith.constant 16 : index
    %176 = vector.load %arg10[%c0_91, %c16_92] : memref<16x290xf32, #tpu.memory_space<vmem>>, vector<16x256xf32>
    %cst_93 = arith.constant 0.000000e+00 : f32
    %177 = vector.shape_cast %35 : vector<1x256xi1> to vector<1x256xi1>
    %178 = vector.broadcast %177 : vector<1x256xi1> to vector<16x256xi1>
    %179 = vector.broadcast %cst_93 : f32 to vector<16x256xf32>
    %180 = arith.select %178, %176, %179 : vector<16x256xi1>, vector<16x256xf32>
    %181 = arith.truncf %180 : vector<16x256xf32> to vector<16x256xbf16>
    %c48_94 = arith.constant 48 : index
    %c0_95 = arith.constant 0 : index
    %182 = vector.load %arg11[%c48_94, %c0_95] : memref<144x256xbf16, #tpu.memory_space<vmem>>, vector<16x256xbf16>
    tpu.vector_store %arg11[%c48_94, %c0_95], %181 {strides = array<i32>} : memref<144x256xbf16, #tpu.memory_space<vmem>>, vector<16x256xbf16>,
    %c0_96 = arith.constant 0 : index
    %c17_97 = arith.constant 17 : index
    %183 = vector.load %arg10[%c0_96, %c17_97] : memref<16x290xf32, #tpu.memory_space<vmem>>, vector<16x256xf32>
    %184 = arith.truncf %183 : vector<16x256xf32> to vector<16x256xbf16>
    %c64_98 = arith.constant 64 : index
    %c0_99 = arith.constant 0 : index
    %185 = vector.load %arg11[%c64_98, %c0_99] : memref<144x256xbf16, #tpu.memory_space<vmem>>, vector<16x256xbf16>
    tpu.vector_store %arg11[%c64_98, %c0_99], %184 {strides = array<i32>} : memref<144x256xbf16, #tpu.memory_space<vmem>>, vector<16x256xbf16>,
    %c0_100 = arith.constant 0 : index
    %c18_101 = arith.constant 18 : index
    %186 = vector.load %arg10[%c0_100, %c18_101] : memref<16x290xf32, #tpu.memory_space<vmem>>, vector<16x256xf32>
    %cst_102 = arith.constant 0.000000e+00 : f32
    %187 = vector.shape_cast %37 : vector<1x256xi1> to vector<1x256xi1>
    %188 = vector.broadcast %187 : vector<1x256xi1> to vector<16x256xi1>
    %189 = vector.broadcast %cst_102 : f32 to vector<16x256xf32>
    %190 = arith.select %188, %186, %189 : vector<16x256xi1>, vector<16x256xf32>
    %191 = arith.truncf %190 : vector<16x256xf32> to vector<16x256xbf16>
    %c80_103 = arith.constant 80 : index
    %c0_104 = arith.constant 0 : index
    %192 = vector.load %arg11[%c80_103, %c0_104] : memref<144x256xbf16, #tpu.memory_space<vmem>>, vector<16x256xbf16>
    tpu.vector_store %arg11[%c80_103, %c0_104], %191 {strides = array<i32>} : memref<144x256xbf16, #tpu.memory_space<vmem>>, vector<16x256xbf16>,
    %c0_105 = arith.constant 0 : index
    %c32_106 = arith.constant 32 : index
    %193 = vector.load %arg10[%c0_105, %c32_106] : memref<16x290xf32, #tpu.memory_space<vmem>>, vector<16x256xf32>
    %cst_107 = arith.constant 0.000000e+00 : f32
    %194 = vector.shape_cast %35 : vector<1x256xi1> to vector<1x256xi1>
    %195 = vector.broadcast %194 : vector<1x256xi1> to vector<16x256xi1>
    %196 = vector.broadcast %cst_107 : f32 to vector<16x256xf32>
    %197 = arith.select %195, %193, %196 : vector<16x256xi1>, vector<16x256xf32>
    %198 = arith.truncf %197 : vector<16x256xf32> to vector<16x256xbf16>
    %c96_108 = arith.constant 96 : index
    %c0_109 = arith.constant 0 : index
    %199 = vector.load %arg11[%c96_108, %c0_109] : memref<144x256xbf16, #tpu.memory_space<vmem>>, vector<16x256xbf16>
    tpu.vector_store %arg11[%c96_108, %c0_109], %198 {strides = array<i32>} : memref<144x256xbf16, #tpu.memory_space<vmem>>, vector<16x256xbf16>,
    %c0_110 = arith.constant 0 : index
    %c33_111 = arith.constant 33 : index
    %200 = vector.load %arg10[%c0_110, %c33_111] : memref<16x290xf32, #tpu.memory_space<vmem>>, vector<16x256xf32>
    %201 = arith.truncf %200 : vector<16x256xf32> to vector<16x256xbf16>
    %c112_112 = arith.constant 112 : index
    %c0_113 = arith.constant 0 : index
    %202 = vector.load %arg11[%c112_112, %c0_113] : memref<144x256xbf16, #tpu.memory_space<vmem>>, vector<16x256xbf16>
    tpu.vector_store %arg11[%c112_112, %c0_113], %201 {strides = array<i32>} : memref<144x256xbf16, #tpu.memory_space<vmem>>, vector<16x256xbf16>,
    %c0_114 = arith.constant 0 : index
    %c34_115 = arith.constant 34 : index
    %203 = vector.load %arg10[%c0_114, %c34_115] : memref<16x290xf32, #tpu.memory_space<vmem>>, vector<16x256xf32>
    %cst_116 = arith.constant 0.000000e+00 : f32
    %204 = vector.shape_cast %37 : vector<1x256xi1> to vector<1x256xi1>
    %205 = vector.broadcast %204 : vector<1x256xi1> to vector<16x256xi1>
    %206 = vector.broadcast %cst_116 : f32 to vector<16x256xf32>
    %207 = arith.select %205, %203, %206 : vector<16x256xi1>, vector<16x256xf32>
    %208 = arith.truncf %207 : vector<16x256xf32> to vector<16x256xbf16>
    %c128_117 = arith.constant 128 : index
    %c0_118 = arith.constant 0 : index
    %209 = vector.load %arg11[%c128_117, %c0_118] : memref<144x256xbf16, #tpu.memory_space<vmem>>, vector<16x256xbf16>
    tpu.vector_store %arg11[%c128_117, %c0_118], %208 {strides = array<i32>} : memref<144x256xbf16, #tpu.memory_space<vmem>>, vector<16x256xbf16>,
    %c0_119 = arith.constant 0 : index
    %c0_120 = arith.constant 0 : index
    %210 = vector.load %arg11[%c0_119, %c0_120] : memref<144x256xbf16, #tpu.memory_space<vmem>>, vector<144x256xbf16>
    %cst_121 = arith.constant dense<0.000000e+00> : vector<16x256xf32>
    %211 = tpu.matmul %157, %210, %cst_121 {dimension_numbers = #tpu.dot_dimension_numbers<[1], [0], [0], [1], [0, 0, 1, 1], [], []>} : vector<16x144xbf16>, vector<144x256xbf16>, vector<16x256xf32> -> vector<16x256xf32>
    %212 = vector.broadcast %158 : vector<16x1xf32> to vector<16x256xf32>
    %213 = arith.addf %211, %212 : vector<16x256xf32>
    %c0_122 = arith.constant 0 : index
    %c0_123 = arith.constant 0 : index
    %c0_124 = arith.constant 0 : index
    %214 = vector.load %arg9[%c0_122, %c0_123, %c0_124] : memref<1x16x256xf32, #tpu.memory_space<vmem>>, vector<1x16x256xf32>
    %215 = vector.shape_cast %214 : vector<1x16x256xf32> to vector<16x256xf32>
    %216 = vector.shape_cast %213 : vector<16x256xf32> to vector<1x16x256xf32>
    tpu.vector_store %arg9[%c0_122, %c0_123, %c0_124], %216 {strides = array<i32>} : memref<1x16x256xf32, #tpu.memory_space<vmem>>, vector<1x16x256xf32>,
    return
  }
  func.func @transform_0(%arg0: i32) -> (i32, i32, i32) {
    %c0_i32 = arith.constant 0 : i32
    %c0_i32_0 = arith.constant 0 : i32
    %c0_i32_1 = arith.constant 0 : i32
    return %arg0, %c0_i32, %c0_i32_0 : i32, i32, i32
  }
  func.func @transform_1(%arg0: i32) -> (i32, i32, i32) {
    %c0_i32 = arith.constant 0 : i32
    %c0_i32_0 = arith.constant 0 : i32
    %c0_i32_1 = arith.constant 0 : i32
    return %arg0, %c0_i32, %c0_i32_0 : i32, i32, i32
  }
  func.func @transform_2(%arg0: i32) -> (i32, i32) {
    %c0_i32 = arith.constant 0 : i32
    %c0_i32_0 = arith.constant 0 : i32
    %c0_i32_1 = arith.constant 0 : i32
    return %c0_i32, %c0_i32_0 : i32, i32
  }
  func.func @transform_3(%arg0: i32) -> (i32, i32) {
    %c0_i32 = arith.constant 0 : i32
    %c0_i32_0 = arith.constant 0 : i32
    %c0_i32_1 = arith.constant 0 : i32
    return %c0_i32, %c0_i32_0 : i32, i32
  }
  func.func @transform_4(%arg0: i32) -> (i32, i32) {
    %c0_i32 = arith.constant 0 : i32
    %c0_i32_0 = arith.constant 0 : i32
    %c0_i32_1 = arith.constant 0 : i32
    return %c0_i32, %c0_i32_0 : i32, i32
  }
  func.func @transform_5(%arg0: i32) -> (i32, i32) {
    %c0_i32 = arith.constant 0 : i32
    %c0_i32_0 = arith.constant 0 : i32
    %c0_i32_1 = arith.constant 0 : i32
    return %c0_i32, %c0_i32_0 : i32, i32
  }
  func.func @transform_6(%arg0: i32) -> (i32, i32) {
    %c0_i32 = arith.constant 0 : i32
    %c0_i32_0 = arith.constant 0 : i32
    %c0_i32_1 = arith.constant 0 : i32
    return %c0_i32, %c0_i32_0 : i32, i32
  }
  func.func @transform_7(%arg0: i32) -> (i32, i32) {
    %c0_i32 = arith.constant 0 : i32
    %c0_i32_0 = arith.constant 0 : i32
    %c0_i32_1 = arith.constant 0 : i32
    return %c0_i32, %c0_i32_0 : i32, i32
  }
  func.func @transform_8(%arg0: i32) -> (i32, i32, i32) {
    %c0_i32 = arith.constant 0 : i32
    %c0_i32_0 = arith.constant 0 : i32
    %c0_i32_1 = arith.constant 0 : i32
    return %arg0, %c0_i32, %c0_i32_0 : i32, i32, i32
  }
}

</mosaic_0001>

<bundles_post_ra>
// kernel: adain_resnet_block_pallas.1
= control target key start
LH: loop header
LB: loop body
LE: loop exit
PB: predicated region body
PF: predicated region fallthrough
CT: control target
= control target key end

     0   :  { %s1800_s27 = smov 0   ;;  %s2145_s0 = inlined_call_operand.vmem [shape: f32[2,16,256], index: 0, kind: input, shape index: {}]   ;;  %s2146_s1 = inlined_call_operand.vmem [shape: f32[2,1,8], index: 1, kind: input, shape index: {}]   ;;  %s2147_s2 = inlined_call_operand.vmem [shape: f32[64,8], index: 2, kind: input, shape index: {}]   ;;  %s2148_s3 = inlined_call_operand.vmem [shape: f32[64,1], index: 3, kind: input, shape index: {}]   ;;  %s2149_s4 = inlined_call_operand.vmem [shape: bf16[16,144], index: 4, kind: input, shape index: {}]   ;;  %s2150_s5 = inlined_call_operand.vmem [shape: f32[16,1], index: 5, kind: input, shape index: {}]   ;;  %s2151_s6 = inlined_call_operand.vmem [shape: bf16[16,144], index: 6, kind: input, shape index: {}]   ;;  %s2152_s7 = inlined_call_operand.vmem [shape: f32[16,1], index: 7, kind: input, shape index: {}]   ;;  %s2153_s8 = inlined_call_operand.vmem [shape: f32[2,16,256], index: 8, kind: output, shape index: {}]  }
   0x1 LB: > { %s1459_s28 = sadd.s32 4294967295, %s1742_s27   ;;  %p1463_p0 = scmp.ge.s32.totalorder %s1742_s27, 1  ;;  %s1742_s27 = sphi %s1800_s27, %s18_s27  }
   0x2   : > { %p270_p1 = scmp.lt.s32.totalorder %s1742_s27, 3 }
   0x4   : > { %p271_p2 = pnand %p1463_p0, %p270_p1 }
   0x5   : > { %p307_p3 = scmp.lt.s32.totalorder (!%p271_p2), %s1459_s28, 1  ;;  %v321_v0 = vld [vmem:[%s2147_s2] sm:$0xff] (!%p271_p2)  ;;  %v323_v1 = vld [vmem:[%s2147_s2 + $0x10] sm:$0xff] (!%p271_p2)  ;;  %v322_v2 = vld [vmem:[%s2147_s2 + $0x8] sm:$0xff] (!%p271_p2)  ;;  %vm344_vm0 = vcmask (!%p271_p2), 64512   ;;  %v1744_v25 = vmov (!%p271_p2), 0  }
   0x6   : > { %274 = sbr.rel (%p271_p2) target bundleno = 1506 (0x5e2), region = 52  ;;  %v324_v3 = vld [vmem:[%s2147_s2 + $0x18] sm:$0xff] (!%p271_p2)  ;;  %1571 = vset.pattern.permute.xlu1 (!%p271_p2), %v1744_v25  ;;  %1570 = vset.pattern.permute.xlu0 (!%p271_p2), %v1744_v25  ;;  %v369_v26 = vld [vmem:[%s2148_s3] sm:$0xff] (!%p271_p2)  ;;  %v371_v27 = vld [vmem:[%s2148_s3 + $0x10] sm:$0xff] (!%p271_p2)  ;;  %vm385_vm1 = vcmask (!%p271_p2), 138240   ;;  %v1745_v40 = vmov (!%p271_p2), 0.0  }
   0x7   : > { %v370_v32 = vld [vmem:[%s2148_s3 + $0x8] sm:$0xff] (!%p271_p2)  ;;  %v372_v36 = vld [vmem:[%s2148_s3 + $0x18] sm:$0xff] (!%p271_p2)  ;;  %386 = vst.msk [vmem:[#allocation2] sm:$0xff] (!%p271_p2), %vm385_vm1, %v1745_v40  ;;  %387 = vst.msk [vmem:[#allocation2 + $0x18] sm:$0xff] (!%p271_p2), %vm385_vm1, %v1745_v40  ;;  %vm388_vm2 = vcmask (!%p271_p2), 277640   ;;  %s1746_s10 = smov (!%p271_p2), 17  }
   0x8   : > { %389 = vst.msk [vmem:[#allocation2 + $0x10] sm:$0xff] (!%p271_p2), %vm388_vm2, %v1745_v40  ;;  %390 = vst.msk [vmem:[#allocation2 + $0x28] sm:$0xff] (!%p271_p2), %vm388_vm2, %v1745_v40  ;;  %vm523_vm3 = vcmask (!%p271_p2), 1047688   ;;  %s1747_s11 = smov (!%p271_p2), 112   ;;  %s1748_s12 = smov (!%p271_p2), 126   ;;  %vm871_vm8 = vcmask (!%p271_p2), 130048  }
   0x9   : > { %s1749_s13 = smov (!%p271_p2), 127   ;;  %s1750_s14 = smov (!%p271_p2), 111   ;;  %vm603_vm9 = vcmask (!%p271_p2), 1031168   ;;  %vm568_vm10 = vcmask (!%p271_p2), 1039360   ;;  %vm644_vm12 = vcmask (!%p271_p2), 916480   ;;  %vm679_vm2 = vcmask (!%p271_p2), 908288  }
   0xa   : > { %s1751_s15 = smov (!%p271_p2), 110   ;;  %s1752_s16 = smov (!%p271_p2), 96  }
   0xd   : > { %s2163_s28 = smov (!%p307_p3, %s1459_s28), 1 }
   0xe   : > { %s314_s17 = scalar_lea.vmem %s2146_s1, %s2163_s28  ;;  %s1477_s18 = sshll.u32 %s2163_s28, 5 }
   0xf   : > { %v1827_v4 = vld [vmem:[%s314_s17] ss:$0 sm:$0xff]  ;;  %s311_s21 = scalar_lea.vmem %s2145_s0, %s1477_s18  ;;  %s1753_s17 = smov 95  }
  0x10   : > { %v336_v5 = vmul.f32 %v1827_v4, %v321_v0  ;;  %v338_v6 = vmul.f32 %v1827_v4, %v323_v1  ;;  %v337_v7 = vmul.f32 %v1827_v4, %v322_v2  ;;  %v339_v8 = vmul.f32 %v1827_v4, %v324_v3  ;;  %v1840_v11 = vld [vmem:[%s311_s21] sm:$0xff]  ;;  %v1842_v12 = vld [vmem:[%s311_s21 + $0x8] sm:$0xff]  ;;  %v1846_v15 = vld [vmem:[%s311_s21 + $0x10] sm:$0xff]  ;;  %s319_s25 = scalar_lea.vmem %s2153_s8, %s1477_s18 }
  0x11   : > { %v1848_v16 = vld [vmem:[%s311_s21 + $0x18] sm:$0xff]  ;;  %v426_v17 = vadd.f32 %v1842_v12, %v1840_v11  ;;  %v435_v18 = vmul.f32 %v1840_v11, %v1840_v11  ;;  %v436_v19 = vmul.f32 %v1842_v12, %v1842_v12  ;;  %v437_v21 = vmul.f32 %v1846_v15, %v1846_v15  ;;  %s1754_s21 = smov 94  }
  0x12   : > { %v345_v9 = vsel %vm344_vm0, %v336_v5, 0.0  ;;  %v351_v10 = vsel %vm344_vm0, %v338_v6, 0.0  ;;  %v348_v13 = vsel %vm344_vm0, %v337_v7, 0.0  ;;  %v354_v14 = vsel %vm344_vm0, %v339_v8, 0.0 }
  0x13   : > { %346 = vadd.xlane.f32.xlu0 %v345_v9  ;;  %352 = vadd.xlane.f32.xlu1 %v351_v10  ;;  %v429_v20 = vadd.f32 %v1848_v16, %v1846_v15  ;;  %v438_v22 = vmul.f32 %v1848_v16, %v1848_v16  ;;  %v439_v23 = vadd.f32 %v436_v19, %v435_v18 }
  0x15   : > { %v442_v24 = vadd.f32 %v438_v22, %v437_v21 }
  0x17   : > { %349 = vadd.xlane.f32.xlu0 %v348_v13  ;;  %355 = vadd.xlane.f32.xlu1 %v354_v14 }
  0x1b   : > { %427 = vadd.xlane.f32.xlu0 %v426_v17  ;;  %430 = vadd.xlane.f32.xlu1 %v429_v20 }
  0x1f   : > { %440 = vadd.xlane.f32.xlu0 %v439_v23  ;;  %443 = vadd.xlane.f32.xlu1 %v442_v24  ;;  %v391_v24 = vlaneseq }
  0x21   : > { %v1884_v25 = vand.u32 127, %v391_v24 }
  0xa0   : > { %v347_v28 = vpop.xlane.xlu0 %346  ;;  %v353_v29 = vpop.xlane.xlu1 %352 }
  0xa1   : > { %v377_v30 = vadd.f32 %v369_v26, %v347_v28  ;;  %v379_v31 = vadd.f32 %v371_v27, %v353_v29  ;;  %v1888_v27 = vadd.s32 128, %v1884_v25 }
  0xa3   : > { %v453_v33 = vadd.f32 1.0, %v377_v30  ;;  %483 = vperm.xlu1 %1571, %v379_v31   ;;  %v405_v29 = vand.u32 15, %v1888_v27  ;;  %v398_v31 = vand.u32 15, %v1884_v25 }
  0xa4   : > { %v350_v34 = vpop.xlane.xlu0 %349  ;;  %v356_v37 = vpop.xlane.xlu1 %355 }
  0xa5   : > { %v378_v35 = vadd.f32 %v370_v32, %v350_v34  ;;  %469 = vperm.xlu0 %1570, %v453_v33   ;;  %v380_v39 = vadd.f32 %v372_v36, %v356_v37  ;;  %vm419_vm4 = vcmp.ge.s32.totalorder %v405_v29, 1  ;;  %vm418_vm6 = vcmp.ge.s32.totalorder %v398_v31, 1 }
  0xa6   : > { %vm1899_vm5 = vmpackc.low %vm419_vm4, %vm419_vm4  ;;  %vm421_vm11 = vcmp.le.s32.totalorder %v405_v29, 14  ;;  %vm420_vm14 = vcmp.le.s32.totalorder %v398_v31, 14  ;;  %vm751_vm4 = vcmask 785408  }
  0xa7   : > { %v454_v38 = vadd.f32 1.0, %v378_v35  ;;  %vm1907_vm7 = vmpackc.low %vm418_vm6, %vm418_vm6  ;;  %vm786_vm6 = vcmask 777216  }
  0xa8   : > { %v428_v41 = vpop.xlane.xlu0 %427  ;;  %v431_v44 = vpop.xlane.xlu1 %430  ;;  %vm1973_vm13 = vmpackc.low %vm421_vm11, %vm421_vm11  ;;  %vm817_vm11 = vcmask 769024  }
  0xa9   : > { %474 = vperm.xlu1 %1571, %v454_v38   ;;  %v433_v42 = vmul.f32 0.00390625, %v428_v41  ;;  %v434_v47 = vmul.f32 0.00390625, %v431_v44  ;;  %vm1985_vm15 = vmpackc.low %vm420_vm14, %vm420_vm14 }
  0xab   : > { %v447_v45 = vmul.f32 %v433_v42, %v433_v42  ;;  %v448_v50 = vmul.f32 %v434_v47, %v434_v47  ;;  %v455_v57 = vsub.f32 %v1840_v11, %v433_v42  ;;  %v456_v58 = vsub.f32 %v1842_v12, %v433_v42 }
  0xac   : > { %v441_v43 = vpop.xlane.xlu0 %440  ;;  %v444_v48 = vpop.xlane.xlu1 %443  ;;  %v457_v0 = vsub.f32 %v1846_v15, %v434_v47  ;;  %v458_v5 = vsub.f32 %v1848_v16, %v434_v47  ;;  %v1724_v47 = vld [vmem:[%s2149_s4 + $0x4] ss:$8 sps:$4 sm:$0xff]  }
  0xad   : > { %488 = vperm.xlu1 %1571, %v380_v39   ;;  %v445_v46 = vmul.f32 0.00390625, %v441_v43  ;;  %v446_v51 = vmul.f32 0.00390625, %v444_v48  ;;  %1471 = vmatprep.mubr.msk.bf16.mxu0 %vm871_vm8, %v1724_v47  ;;  %v533_v48 = vld [vmem:[%s2150_s5 + $0x8] sm:$0xff] }
  0xaf   : > { %v449_v49 = vsub.f32 %v445_v46, %v447_v45  ;;  %v450_v53 = vsub.f32 %v446_v51, %v448_v50  ;;  %v326_v50 = vld [vmem:[%s2147_s2 + $0x28] sm:$0xff] }
  0xb0   : > { %v341_v51 = vmul.f32 %v1827_v4, %v326_v50 }
  0xb1   : > { %v451_v52 = vmax.f32 %v449_v49, 0.0  ;;  %v452_v55 = vmax.f32 %v450_v53, 0.0  ;;  %v532_v49 = vld [vmem:[%s2150_s5] sm:$0xff] }
  0xb2   : > { %v325_v53 = vld [vmem:[%s2147_s2 + $0x20] sm:$0xff] }
  0xb3   : > { %v459_v54 = vadd.f32 1e-05, %v451_v52  ;;  %v460_v56 = vadd.f32 1e-05, %v452_v55  ;;  %v327_v52 = vld [vmem:[%s2147_s2 + $0x30] sm:$0xff] }
  0xb4   : > { %v342_v55 = vmul.f32 %v1827_v4, %v327_v52 }
  0xb5   : > { %1728 = vrsqrt.f32 %v459_v54  ;;  %v360_v54 = vsel %vm344_vm0, %v341_v51, 0.0 }
  0xb6   : > { %1730 = vrsqrt.f32 %v460_v56  ;;  %v340_v56 = vmul.f32 %v1827_v4, %v325_v53 }
  0xbf   : > { %v1729_v59 = vpop.eup %1728 }
  0xc0   : > { %v463_v61 = vmul.f32 %v1729_v59, %v455_v57  ;;  %v464_v62 = vmul.f32 %v1729_v59, %v456_v58  ;;  %v1731_v3 = vpop.eup %1730  ;;  %v328_v57 = vld [vmem:[%s2147_s2 + $0x38] sm:$0xff]  ;;  %v363_v58 = vsel %vm344_vm0, %v342_v55, 0.0  ;;  %v357_v59 = vsel %vm344_vm0, %v340_v56, 0.0 }
  0xc1   : > { %v465_v10 = vmul.f32 %v1731_v3, %v457_v0  ;;  %v466_v12 = vmul.f32 %v1731_v3, %v458_v5 }
 0x122   : > { %v484_v60 = vpop.permute.xlu1 %483 }
 0x124   : > { %v470_v63 = vpop.permute.xlu0 %469 }
 0x125   : > { %v477_v1 = vmul.f32 %v470_v63, %v463_v61  ;;  %v478_v2 = vmul.f32 %v470_v63, %v464_v62 }
 0x127   : > { %v491_v6 = vadd.f32 %v484_v60, %v477_v1  ;;  %v492_v7 = vadd.f32 %v484_v60, %v478_v2  ;;  %v343_v60 = vmul.f32 %v1827_v4, %v328_v57 }
 0x128   : > { %v475_v8 = vpop.permute.xlu1 %474 }
 0x129   : > { %v495_v9 = vmul.f32 0.2, %v491_v6  ;;  %v496_v11 = vmul.f32 0.2, %v492_v7  ;;  %v479_v13 = vmul.f32 %v475_v8, %v465_v10  ;;  %v480_v18 = vmul.f32 %v475_v8, %v466_v12 }
 0x12a   : > { %v366_v61 = vsel %vm344_vm0, %v343_v60, 0.0  ;;  %vm710_vm0 = vcmask 900096  }
 0x12b   : > { %v499_v14 = vmax.f32 %v491_v6, %v495_v9  ;;  %v500_v21 = vmax.f32 %v492_v7, %v496_v11 }
 0x12c   : > { %v489_v17 = vpop.permute.xlu1 %488 }
 0x12d   : > { %v493_v19 = vadd.f32 %v489_v17, %v479_v13  ;;  %507 = vrot.lane.b32.xlu1 %v499_v14, %s1746_s10  ;;  %v494_v15 = vadd.f32 %v489_v17, %v480_v18 }
 0x12f   : > { %v497_v20 = vmul.f32 0.2, %v493_v19  ;;  %v498_v16 = vmul.f32 0.2, %v494_v15 }
 0x131   : > { %509 = vrot.lane.b32.xlu1 %v500_v21, %s1746_s10  ;;  %v501_v22 = vmax.f32 %v493_v19, %v497_v20  ;;  %v502_v23 = vmax.f32 %v494_v15, %v498_v16 }
 0x135   : > { %511 = vrot.lane.b32.xlu1 %v501_v22, %s1746_s10 }
 0x139   : > { %513 = vrot.lane.b32.xlu1 %v502_v23, %s1746_s10 }
 0x19f   : > { %v508_v26 = vpop.permute.xlu1 %507 }
 0x1a0   : > { %524 = vst.msk [vmem:[#allocation2] sm:$0xff] %vm523_vm3, %v508_v26 }
 0x1a3   : > { %v510_v28 = vpop.permute.xlu1 %509 }
 0x1a4   : > { %526 = vst.msk [vmem:[#allocation2 + $0x10] sm:$0xff] %vm385_vm1, %v510_v28  ;;  %v515_v33 = vsel %vm385_vm1, %v508_v26, %v510_v28 }
 0x1a7   : > { %v512_v30 = vpop.permute.xlu1 %511  ;;  %v620_v37 = vld [vmem:[#allocation2] sm:$0xff] }
 0x1a8   : > { %527 = vst.msk [vmem:[#allocation2 + $0x18] sm:$0xff] %vm523_vm3, %v512_v30 }
 0x1ab   : > { %v514_v32 = vpop.permute.xlu1 %513  ;;  %v577_v42 = vld [vmem:[#allocation2 + $0x10] sm:$0xff] }
 0x1ac   : > { %v516_v34 = vsel %vm385_vm1, %v512_v30, %v514_v32  ;;  %529 = vst.msk [vmem:[#allocation2 + $0x28] sm:$0xff] %vm385_vm1, %v514_v32  ;;  %v1582_v44 = vpack.i.bf16 %v577_v42, %v515_v33 }
 0x1ad   : > { %v1480_v36 = vpack.c.bf16 %v516_v34, %v515_v33 }
 0x1af   : > { %v623_v38 = vld [vmem:[#allocation2 + $0x18] sm:$0xff]  ;;  %1481 = vmatprep.subr.msk.bf16.mxu0 %vm1899_vm5, %v1480_v36 }
 0x1b0   : > { %v1577_v39 = vpack.i.bf16 %v623_v38, %v620_v37  ;;  %v1483_v41 = vpack.c.bf16 %v623_v38, %v620_v37 }
 0x1b2   : > { %1578 = vrot.lane.b32.xlu1 %v1577_v39, %s1747_s11  ;;  %1573 = vrot.lane.b32.xlu0 %v1577_v39, %s1748_s12 }
 0x1b3   : > { %v580_v43 = vld [vmem:[#allocation2 + $0x28] sm:$0xff]  ;;  %1484 = vmatpush1.bf16.msk.msra.mxu0 %vm1907_vm7, %v1483_v41 }
 0x1b4   : > { %v1587_v45 = vpack.i.bf16 %v580_v43, %v516_v34  ;;  %v558_v46 = vpack.c.bf16 %v580_v43, %v577_v42 }
 0x1b6   : > { %1583 = vrot.lane.b32.xlu0 %v1582_v44, %s1748_s12  ;;  %1588 = vrot.lane.b32.xlu1 %v1587_v45, %s1748_s12 }
 0x1ba   : > { %1598 = vrot.lane.b32.xlu0 %v1587_v45, %s1747_s11  ;;  %1593 = vrot.lane.b32.xlu1 %v1582_v44, %s1747_s11 }
 0x1be   : > { %566 = vrot.lane.b32.xlu0 %v558_v46, %s1749_s13  ;;  %562 = vrot.lane.b32.xlu1 %v1483_v41, %s1749_s13 }
 0x1c2   : > { %673 = vrot.lane.b32.xlu0 %v1483_v41, %s1750_s14  ;;  %564 = vrot.lane.b32.xlu1 %v1480_v36, %s1749_s13 }
 0x1c6   : > { %1608 = vrot.lane.b32.xlu0 %v1587_v45, %s1751_s15  ;;  %677 = vrot.lane.b32.xlu1 %v558_v46, %s1750_s14 }
 0x1ca   : > { %1618 = vrot.lane.b32.xlu0 %v1582_v44, %s1752_s16  ;;  %1603 = vrot.lane.b32.xlu1 %v1582_v44, %s1751_s15 }
 0x1ce   : > { %675 = vrot.lane.b32.xlu0 %v1480_v36, %s1750_s14  ;;  %1613 = vrot.lane.b32.xlu1 %v1577_v39, %s1751_s15 }
 0x1d2   : > { %1628 = vrot.lane.b32.xlu0 %v1577_v39, %s1752_s16  ;;  %1623 = vrot.lane.b32.xlu1 %v1587_v45, %s1752_s16 }
 0x1d6   : > { %784 = vrot.lane.b32.xlu0 %v558_v46, %s1753_s17  ;;  %780 = vrot.lane.b32.xlu1 %v1483_v41, %s1753_s17 }
 0x1da   : > { %1633 = vrot.lane.b32.xlu0 %v1582_v44, %s1754_s21  ;;  %782 = vrot.lane.b32.xlu1 %v1480_v36, %s1753_s17 }
 0x1de   : > { %1643 = vrot.lane.b32.xlu0 %v1577_v39, %s1754_s21  ;;  %1638 = vrot.lane.b32.xlu1 %v1587_v45, %s1754_s21 }
 0x1e2   : > { %859 = vperm.xlu0 %1570, %v533_v48   ;;  %854 = vperm.xlu1 %1571, %v532_v49  }
 0x201   : > { %361 = vadd.xlane.f32.xlu0 %v360_v54 }
 0x205   : > { %364 = vadd.xlane.f32.xlu0 %v363_v58 }
 0x206   : > { %358 = vadd.xlane.f32.xlu1 %v357_v59 }
 0x20a   : > { %367 = vadd.xlane.f32.xlu1 %v366_v61 }
 0x224   : > { %v1574_v62 = vpop.permute.xlu0 %1573  ;;  %v1579_v63 = vpop.permute.xlu1 %1578 }
 0x225   : > { %v1576_v18 = vunpack.i.h.bf16 %v1574_v62  ;;  %v1575_v19 = vunpack.i.l.bf16 %v1574_v62  ;;  %v1581_v29 = vunpack.i.h.bf16 %v1579_v63  ;;  %v1580_v30 = vunpack.i.l.bf16 %v1579_v63 }
 0x228   : > { %v1584_v0 = vpop.permute.xlu0 %1583  ;;  %v1589_v1 = vpop.permute.xlu1 %1588 }
 0x229   : > { %v1586_v5 = vunpack.i.h.bf16 %v1584_v0  ;;  %v1585_v6 = vunpack.i.l.bf16 %v1584_v0  ;;  %v1591_v7 = vunpack.i.h.bf16 %v1589_v1  ;;  %v1590_v8 = vunpack.i.l.bf16 %v1589_v1 }
 0x22b   : > { %v605_v4 = vsel %vm603_vm9, %v1585_v6, %v1586_v5  ;;  %v607_v11 = vsel %vm603_vm9, %v1590_v8, %v1591_v7  ;;  %v604_v23 = vsel %vm603_vm9, %v1575_v19, %v1585_v6  ;;  %v606_v24 = vsel %vm603_vm9, %v1576_v18, %v1590_v8 }
 0x22c   : > { %v1599_v2 = vpop.permute.xlu0 %1598  ;;  %v1594_v3 = vpop.permute.xlu1 %1593  ;;  %v1486_v26 = vpack.c.bf16 %v607_v11, %v605_v4  ;;  %v1489_v31 = vpack.c.bf16 %v606_v24, %v604_v23 }
 0x22d   : > { %v1601_v12 = vunpack.i.h.bf16 %v1599_v2  ;;  %v1600_v13 = vunpack.i.l.bf16 %v1599_v2  ;;  %v1596_v14 = vunpack.i.h.bf16 %v1594_v3  ;;  %v1595_v17 = vunpack.i.l.bf16 %v1594_v3 }
 0x22f   : > { %v648_v27 = vsel %vm644_vm12, %v1600_v13, %v1601_v12  ;;  %v646_v28 = vsel %vm644_vm12, %v1595_v17, %v1596_v14  ;;  %v647_v34 = vsel %vm644_vm12, %v1581_v29, %v1600_v13  ;;  %v645_v36 = vsel %vm644_vm12, %v1580_v30, %v1595_v17  ;;  %v1722_v30 = vld [vmem:[%s2149_s4] ss:$8 sps:$4 sm:$0xff]  }
 0x230   : > { %v567_v9 = vpop.permute.xlu0 %566  ;;  %v563_v10 = vpop.permute.xlu1 %562  ;;  %v1492_v37 = vpack.c.bf16 %v648_v27, %v646_v28  ;;  %v1495_v43 = vpack.c.bf16 %v647_v34, %v645_v36 }
 0x234   : > { %v674_v15 = vpop.permute.xlu0 %673  ;;  %v565_v20 = vpop.permute.xlu1 %564 }
 0x235   : > { %v570_v21 = vsel %vm568_vm10, %v565_v20, %v567_v9  ;;  %v569_v16 = vsel %vm568_vm10, %v563_v10, %v565_v20 }
 0x236   : > { %877 = vmatprep.subr.bf16.mxu0 %v570_v21 }
 0x237   : > { %878 = vmatpush1.bf16.msra.mxu0 %v569_v16 }
 0x238   : > { %v1609_v32 = vpop.permute.xlu0 %1608  ;;  %v678_v33 = vpop.permute.xlu1 %677  ;;  %1487 = vmatprep.subr.msk.bf16.mxu0 %vm1973_vm13, %v1486_v26 }
 0x239   : > { %v1611_v38 = vunpack.i.h.bf16 %v1609_v32  ;;  %v1610_v39 = vunpack.i.l.bf16 %v1609_v32 }
 0x23b   : > { %1490 = vmatpush1.bf16.msk.msra.mxu0 %vm1985_vm15, %v1489_v31  ;;  %v714_v47 = vsel %vm710_vm0, %v1610_v39, %v1611_v38  ;;  %v373_v38 = vld [vmem:[%s2148_s3 + $0x20] sm:$0xff] }
 0x23c   : > { %v1619_v41 = vpop.permute.xlu0 %1618  ;;  %v1604_v42 = vpop.permute.xlu1 %1603  ;;  %1493 = vmatprep.subr.msk.bf16.mxu0 %vm1899_vm5, %v1492_v37 }
 0x23d   : > { %v1606_v44 = vunpack.i.h.bf16 %v1604_v42  ;;  %v1605_v45 = vunpack.i.l.bf16 %v1604_v42  ;;  %v1621_v55 = vunpack.i.h.bf16 %v1619_v41  ;;  %v1620_v56 = vunpack.i.l.bf16 %v1619_v41 }
 0x23f   : > { %v712_v46 = vsel %vm710_vm0, %v1605_v45, %v1606_v44  ;;  %1496 = vmatpush1.bf16.msk.msra.mxu0 %vm1907_vm7, %v1495_v43  ;;  %v753_v2 = vsel %vm751_vm4, %v1620_v56, %v1621_v55 }
 0x240   : > { %v676_v48 = vpop.permute.xlu0 %675  ;;  %v1614_v49 = vpop.permute.xlu1 %1613  ;;  %v1498_v54 = vpack.c.bf16 %v714_v47, %v712_v46 }
 0x241   : > { %v1616_v50 = vunpack.i.h.bf16 %v1614_v49  ;;  %v1615_v51 = vunpack.i.l.bf16 %v1614_v49  ;;  %v681_v52 = vsel %vm679_vm2, %v676_v48, %v678_v33  ;;  %v680_v53 = vsel %vm679_vm2, %v674_v15, %v676_v48  ;;  %v374_v33 = vld [vmem:[%s2148_s3 + $0x28] sm:$0xff] }
 0x242   : > { %883 = vmatprep.subr.bf16.mxu0 %v681_v52 }
 0x243   : > { %v713_v57 = vsel %vm710_vm0, %v1616_v50, %v1610_v39  ;;  %v711_v58 = vsel %vm710_vm0, %v1615_v51, %v1605_v45  ;;  %884 = vmatpush1.bf16.msra.mxu0 %v680_v53 }
 0x244   : > { %v1501_v59 = vpack.c.bf16 %v713_v57, %v711_v58  ;;  %v1629_v60 = vpop.permute.xlu0 %1628  ;;  %v1624_v61 = vpop.permute.xlu1 %1623  ;;  %1499 = vmatprep.subr.msk.bf16.mxu0 %vm1973_vm13, %v1498_v54 }
 0x245   : > { %v1631_v62 = vunpack.i.h.bf16 %v1629_v60  ;;  %v1630_v63 = vunpack.i.l.bf16 %v1629_v60  ;;  %v1626_v0 = vunpack.i.h.bf16 %v1624_v61  ;;  %v1625_v1 = vunpack.i.l.bf16 %v1624_v61  ;;  %v376_v61 = vld [vmem:[%s2148_s3 + $0x38] sm:$0xff] }
 0x247   : > { %v752_v3 = vsel %vm751_vm4, %v1630_v63, %v1620_v56  ;;  %v754_v5 = vsel %vm751_vm4, %v1631_v62, %v1625_v1  ;;  %v755_v6 = vsel %vm751_vm4, %v1625_v1, %v1626_v0  ;;  %1502 = vmatpush1.bf16.msk.msra.mxu0 %vm1985_vm15, %v1501_v59  ;;  %v375_v59 = vld [vmem:[%s2148_s3 + $0x30] sm:$0xff] }
 0x248   : > { %v1504_v7 = vpack.c.bf16 %v755_v6, %v753_v2  ;;  %v1507_v8 = vpack.c.bf16 %v754_v5, %v752_v3  ;;  %v785_v9 = vpop.permute.xlu0 %784  ;;  %v781_v10 = vpop.permute.xlu1 %780 }
 0x24a   : > { %1505 = vmatprep.subr.msk.bf16.mxu0 %vm1899_vm5, %v1504_v7 }
 0x24b   : > { %1508 = vmatpush1.bf16.msk.msra.mxu0 %vm1907_vm7, %v1507_v8 }
 0x24c   : > { %v1634_v4 = vpop.permute.xlu0 %1633  ;;  %v783_v11 = vpop.permute.xlu1 %782 }
 0x24d   : > { %v788_v12 = vsel %vm786_vm6, %v783_v11, %v785_v9  ;;  %v787_v13 = vsel %vm786_vm6, %v781_v10, %v783_v11  ;;  %v1636_v14 = vunpack.i.h.bf16 %v1634_v4  ;;  %v1635_v17 = vunpack.i.l.bf16 %v1634_v4 }
 0x24e   : > { %889 = vmatprep.subr.bf16.mxu0 %v788_v12 }
 0x24f   : > { %890 = vmatpush1.bf16.msra.mxu0 %v787_v13  ;;  %v819_v23 = vsel %vm817_vm11, %v1635_v17, %v1636_v14 }
 0x250   : > { %v1644_v18 = vpop.permute.xlu0 %1643  ;;  %v1639_v19 = vpop.permute.xlu1 %1638 }
 0x251   : > { %v1646_v15 = vunpack.i.h.bf16 %v1644_v18  ;;  %v1645_v20 = vunpack.i.l.bf16 %v1644_v18  ;;  %v1641_v21 = vunpack.i.h.bf16 %v1639_v19  ;;  %v1640_v16 = vunpack.i.l.bf16 %v1639_v19 }
 0x253   : > { %v818_v24 = vsel %vm817_vm11, %v1645_v20, %v1635_v17  ;;  %v820_v26 = vsel %vm817_vm11, %v1646_v15, %v1640_v16  ;;  %v821_v27 = vsel %vm817_vm11, %v1640_v16, %v1641_v21 }
 0x254   : > { %v1510_v28 = vpack.c.bf16 %v821_v27, %v819_v23  ;;  %v1513_v29 = vpack.c.bf16 %v820_v26, %v818_v24 }
 0x256   : > { %1511 = vmatprep.subr.msk.bf16.mxu0 %vm1973_vm13, %v1510_v28 }
 0x257   : > { %1514 = vmatpush1.bf16.msk.msra.mxu0 %vm1985_vm15, %v1513_v29 }
 0x25a   : > { %908 = vmatmul.mubr.bf16.vlgmr.msra.gmra.mrb[0].mxu0 %v1722_v30 }
 0x261   : > { %v860_v32 = vpop.permute.xlu0 %859  ;;  %v855_v34 = vpop.permute.xlu1 %854 }
 0x28e   : > { %v362_v31 = vpop.xlane.xlu0 %361 }
 0x28f   : > { %v382_v36 = vadd.f32 %v374_v33, %v362_v31 }
 0x291   : > { %v945_v37 = vadd.f32 1.0, %v382_v36 }
 0x292   : > { %v365_v60 = vpop.xlane.xlu0 %364 }
 0x293   : > { %965 = vperm.xlu1 %1571, %v945_v37   ;;  %v359_v39 = vpop.xlane.xlu1 %358  ;;  %v383_v62 = vadd.f32 %v375_v59, %v365_v60 }
 0x294   : > { %v381_v41 = vadd.f32 %v373_v38, %v359_v39 }
 0x296   : > { %v944_v42 = vadd.f32 1.0, %v381_v41 }
 0x297   : > { %v368_v63 = vpop.xlane.xlu1 %367 }
 0x298   : > { %960 = vperm.xlu0 %1570, %v944_v42   ;;  %v384_v0 = vadd.f32 %v376_v61, %v368_v63 }
 0x312   : > { %v966_v2 = vpop.permute.xlu1 %965 }
 0x317   : > { %v961_v1 = vpop.permute.xlu0 %960 }
 0x32d   : > { %v909_v43 = vpop.f32.mrb[0].mxu0 }
 0x32e   : > { %v910_v44 = vadd.f32 %v909_v43, %v855_v34  ;;  %v911_v45 = vpop.f32.mrb[1].mxu0 }
 0x32f   : > { %v912_v46 = vadd.f32 %v911_v45, %v855_v34  ;;  %v913_v47 = vpop.f32.mrb[2].mxu0 }
 0x330   : > { %v914_v48 = vadd.f32 %v913_v47, %v860_v32  ;;  %v915_v49 = vpop.f32.mrb[3].mxu0  ;;  %v926_v52 = vmul.f32 %v910_v44, %v910_v44 }
 0x331   : > { %v916_v50 = vadd.f32 %v915_v49, %v860_v32  ;;  %v918_v51 = vadd.f32 %v912_v46, %v910_v44  ;;  %v927_v53 = vmul.f32 %v912_v46, %v912_v46 }
 0x332   : > { %v928_v55 = vmul.f32 %v914_v48, %v914_v48 }
 0x333   : > { %919 = vadd.xlane.f32.xlu0 %v918_v51  ;;  %v921_v54 = vadd.f32 %v916_v50, %v914_v48  ;;  %v929_v56 = vmul.f32 %v916_v50, %v916_v50  ;;  %v930_v57 = vadd.f32 %v927_v53, %v926_v52 }
 0x335   : > { %922 = vadd.xlane.f32.xlu1 %v921_v54  ;;  %v933_v58 = vadd.f32 %v929_v56, %v928_v55 }
 0x337   : > { %931 = vadd.xlane.f32.xlu0 %v930_v57 }
 0x339   : > { %934 = vadd.xlane.f32.xlu1 %v933_v58 }
 0x34a   : > { %974 = vperm.xlu1 %1571, %v383_v62  }
 0x34d   : > { %979 = vperm.xlu0 %1570, %v384_v0  }
 0x3c0   : > { %v920_v3 = vpop.xlane.xlu0 %919 }
 0x3c1   : > { %v924_v5 = vmul.f32 0.00390625, %v920_v3  ;;  %v1727_v3 = vld [vmem:[%s2151_s6 + $0x4] ss:$8 sps:$4 sm:$0xff]  }
 0x3c2   : > { %v923_v6 = vpop.xlane.xlu1 %922  ;;  %1474 = vmatprep.mubr.msk.bf16.mxu1 %vm871_vm8, %v1727_v3 }
 0x3c3   : > { %v925_v7 = vmul.f32 0.00390625, %v923_v6  ;;  %v938_v9 = vmul.f32 %v924_v5, %v924_v5  ;;  %v946_v20 = vsub.f32 %v910_v44, %v924_v5  ;;  %v947_v21 = vsub.f32 %v912_v46, %v924_v5  ;;  %v1023_v5 = vld [vmem:[%s2152_s7 + $0x8] sm:$0xff]  ;;  %v1022_v6 = vld [vmem:[%s2152_s7] sm:$0xff] }
 0x3c4   : > { %v932_v8 = vpop.xlane.xlu0 %931 }
 0x3c5   : > { %v936_v10 = vmul.f32 0.00390625, %v932_v8  ;;  %v939_v12 = vmul.f32 %v925_v7, %v925_v7  ;;  %v948_v23 = vsub.f32 %v914_v48, %v925_v7  ;;  %v949_v24 = vsub.f32 %v916_v50, %v925_v7 }
 0x3c6   : > { %v935_v4 = vpop.xlane.xlu1 %934 }
 0x3c7   : > { %v940_v11 = vsub.f32 %v936_v10, %v938_v9  ;;  %v937_v13 = vmul.f32 0.00390625, %v935_v4 }
 0x3c9   : > { %v942_v14 = vmax.f32 %v940_v11, 0.0  ;;  %v941_v17 = vsub.f32 %v937_v13, %v939_v12 }
 0x3ca   : > { %v975_v31 = vpop.permute.xlu1 %974 }
 0x3cb   : > { %v950_v18 = vadd.f32 1e-05, %v942_v14  ;;  %v943_v19 = vmax.f32 %v941_v17, 0.0 }
 0x3cc   : > { %v980_v39 = vpop.permute.xlu0 %979 }
 0x3cd   : > { %1732 = vrsqrt.f32 %v950_v18  ;;  %v951_v15 = vadd.f32 1e-05, %v943_v19 }
 0x3cf   : > { %1734 = vrsqrt.f32 %v951_v15 }
 0x3d7   : > { %v1733_v16 = vpop.eup %1732 }
 0x3d8   : > { %v954_v26 = vmul.f32 %v1733_v16, %v946_v20  ;;  %v955_v27 = vmul.f32 %v1733_v16, %v947_v21 }
 0x3d9   : > { %v1735_v28 = vpop.eup %1734 }
 0x3da   : > { %v968_v29 = vmul.f32 %v961_v1, %v954_v26  ;;  %v969_v30 = vmul.f32 %v961_v1, %v955_v27  ;;  %v956_v32 = vmul.f32 %v1735_v28, %v948_v23  ;;  %v957_v33 = vmul.f32 %v1735_v28, %v949_v24 }
 0x3dc   : > { %v982_v34 = vadd.f32 %v975_v31, %v968_v29  ;;  %v983_v36 = vadd.f32 %v975_v31, %v969_v30  ;;  %v970_v37 = vmul.f32 %v966_v2, %v956_v32  ;;  %v971_v38 = vmul.f32 %v966_v2, %v957_v33 }
 0x3de   : > { %v986_v41 = vmul.f32 0.2, %v982_v34  ;;  %v987_v42 = vmul.f32 0.2, %v983_v36  ;;  %v984_v43 = vadd.f32 %v980_v39, %v970_v37  ;;  %v985_v44 = vadd.f32 %v980_v39, %v971_v38 }
 0x3e0   : > { %v990_v45 = vmax.f32 %v982_v34, %v986_v41  ;;  %v991_v46 = vmax.f32 %v983_v36, %v987_v42  ;;  %v988_v47 = vmul.f32 0.2, %v984_v43  ;;  %v989_v48 = vmul.f32 0.2, %v985_v44 }
 0x3e2   : > { %1000 = vrot.lane.b32.xlu0 %v991_v46, %s1746_s10  ;;  %998 = vrot.lane.b32.xlu1 %v990_v45, %s1746_s10  ;;  %v992_v49 = vmax.f32 %v984_v43, %v988_v47  ;;  %v993_v50 = vmax.f32 %v985_v44, %v989_v48 }
 0x3e6   : > { %1004 = vrot.lane.b32.xlu0 %v993_v50, %s1746_s10  ;;  %1002 = vrot.lane.b32.xlu1 %v992_v49, %s1746_s10 }
 0x454   : > { %v999_v51 = vpop.permute.xlu1 %998  ;;  %v1001_v52 = vpop.permute.xlu0 %1000 }
 0x455   : > { %1014 = vst.msk [vmem:[#allocation2] sm:$0xff] %vm523_vm3, %v999_v51  ;;  %v1006_v53 = vsel %vm385_vm1, %v999_v51, %v1001_v52 }
 0x456   : > { %1016 = vst.msk [vmem:[#allocation2 + $0x10] sm:$0xff] %vm385_vm1, %v1001_v52 }
 0x458   : > { %v1003_v54 = vpop.permute.xlu1 %1002  ;;  %v1005_v55 = vpop.permute.xlu0 %1004 }
 0x459   : > { %1017 = vst.msk [vmem:[#allocation2 + $0x18] sm:$0xff] %vm523_vm3, %v1003_v54  ;;  %v1007_v56 = vsel %vm385_vm1, %v1003_v54, %v1005_v55 }
 0x45a   : > { %1019 = vst.msk [vmem:[#allocation2 + $0x28] sm:$0xff] %vm385_vm1, %v1005_v55  ;;  %v1516_v57 = vpack.c.bf16 %v1007_v56, %v1006_v53 }
 0x45c   : > { %1517 = vmatprep.subr.msk.bf16.mxu1 %vm1899_vm5, %v1516_v57  ;;  %v1100_v60 = vld [vmem:[#allocation2] sm:$0xff] }
 0x45d   : > { %v1102_v58 = vld [vmem:[#allocation2 + $0x10] sm:$0xff] }
 0x45e   : > { %v1652_v59 = vpack.i.bf16 %v1102_v58, %v1006_v53 }
 0x460   : > { %1653 = vrot.lane.b32.xlu1 %v1652_v59, %s1747_s11  ;;  %1648 = vrot.lane.b32.xlu0 %v1652_v59, %s1748_s12  ;;  %v1103_v61 = vld [vmem:[#allocation2 + $0x18] sm:$0xff] }
 0x461   : > { %v1662_v62 = vpack.i.bf16 %v1103_v61, %v1100_v60  ;;  %v1519_v63 = vpack.c.bf16 %v1103_v61, %v1100_v60  ;;  %v1105_v0 = vld [vmem:[#allocation2 + $0x28] sm:$0xff] }
 0x462   : > { %v1672_v1 = vpack.i.bf16 %v1105_v0, %v1007_v56  ;;  %v1044_v2 = vpack.c.bf16 %v1105_v0, %v1102_v58 }
 0x463   : > { %1520 = vmatpush1.bf16.msk.msra.mxu1 %vm1907_vm7, %v1519_v63 }
 0x464   : > { %1663 = vrot.lane.b32.xlu1 %v1662_v62, %s1747_s11  ;;  %1658 = vrot.lane.b32.xlu0 %v1662_v62, %s1748_s12 }
 0x468   : > { %1673 = vrot.lane.b32.xlu0 %v1672_v1, %s1747_s11  ;;  %1668 = vrot.lane.b32.xlu1 %v1672_v1, %s1748_s12 }
 0x46c   : > { %1052 = vrot.lane.b32.xlu0 %v1044_v2, %s1749_s13  ;;  %1048 = vrot.lane.b32.xlu1 %v1519_v63, %s1749_s13 }
 0x470   : > { %1152 = vrot.lane.b32.xlu0 %v1519_v63, %s1750_s14  ;;  %1050 = vrot.lane.b32.xlu1 %v1516_v57, %s1749_s13 }
 0x474   : > { %1683 = vrot.lane.b32.xlu0 %v1672_v1, %s1751_s15  ;;  %1156 = vrot.lane.b32.xlu1 %v1044_v2, %s1750_s14 }
 0x478   : > { %1693 = vrot.lane.b32.xlu0 %v1652_v59, %s1752_s16  ;;  %1678 = vrot.lane.b32.xlu1 %v1652_v59, %s1751_s15 }
 0x47c   : > { %1154 = vrot.lane.b32.xlu0 %v1516_v57, %s1750_s14  ;;  %1688 = vrot.lane.b32.xlu1 %v1662_v62, %s1751_s15 }
 0x480   : > { %1703 = vrot.lane.b32.xlu0 %v1662_v62, %s1752_s16  ;;  %1698 = vrot.lane.b32.xlu1 %v1672_v1, %s1752_s16 }
 0x484   : > { %1260 = vrot.lane.b32.xlu0 %v1044_v2, %s1753_s17  ;;  %1256 = vrot.lane.b32.xlu1 %v1519_v63, %s1753_s17 }
 0x488   : > { %1708 = vrot.lane.b32.xlu0 %v1652_v59, %s1754_s21  ;;  %1258 = vrot.lane.b32.xlu1 %v1516_v57, %s1753_s17 }
 0x48c   : > { %1718 = vrot.lane.b32.xlu0 %v1662_v62, %s1754_s21  ;;  %1713 = vrot.lane.b32.xlu1 %v1672_v1, %s1754_s21 }
 0x490   : > { %1333 = vperm.xlu0 %1570, %v1023_v5   ;;  %1328 = vperm.xlu1 %1571, %v1022_v6  }
 0x4d2   : > { %v1654_v7 = vpop.permute.xlu1 %1653  ;;  %v1649_v8 = vpop.permute.xlu0 %1648 }
 0x4d3   : > { %v1651_v18 = vunpack.i.h.bf16 %v1649_v8  ;;  %v1650_v19 = vunpack.i.l.bf16 %v1649_v8  ;;  %v1656_v16 = vunpack.i.h.bf16 %v1654_v7  ;;  %v1655_v28 = vunpack.i.l.bf16 %v1654_v7 }
 0x4d5   : > { %v1085_v29 = vsel %vm603_vm9, %v1650_v19, %v1651_v18  ;;  %v1125_v42 = vsel %vm644_vm12, %v1655_v28, %v1656_v16 }
 0x4d6   : > { %v1664_v9 = vpop.permute.xlu1 %1663  ;;  %v1659_v10 = vpop.permute.xlu0 %1658 }
 0x4d7   : > { %v1661_v23 = vunpack.i.h.bf16 %v1659_v10  ;;  %v1660_v24 = vunpack.i.l.bf16 %v1659_v10  ;;  %v1666_v36 = vunpack.i.h.bf16 %v1664_v9  ;;  %v1665_v37 = vunpack.i.l.bf16 %v1664_v9 }
 0x4d9   : > { %v1084_v38 = vsel %vm603_vm9, %v1660_v24, %v1650_v19  ;;  %v1124_v46 = vsel %vm644_vm12, %v1665_v37, %v1655_v28  ;;  %v1725_v37 = vld [vmem:[%s2151_s6] ss:$8 sps:$4 sm:$0xff]  }
 0x4da   : > { %v1669_v4 = vpop.permute.xlu1 %1668  ;;  %v1674_v11 = vpop.permute.xlu0 %1673 }
 0x4db   : > { %v1671_v12 = vunpack.i.h.bf16 %v1669_v4  ;;  %v1670_v13 = vunpack.i.l.bf16 %v1669_v4  ;;  %v1676_v20 = vunpack.i.h.bf16 %v1674_v11  ;;  %v1675_v21 = vunpack.i.l.bf16 %v1674_v11 }
 0x4dd   : > { %v1087_v15 = vsel %vm603_vm9, %v1670_v13, %v1671_v12  ;;  %v1086_v33 = vsel %vm603_vm9, %v1661_v23, %v1670_v13  ;;  %v1127_v34 = vsel %vm644_vm12, %v1675_v21, %v1676_v20  ;;  %v1126_v44 = vsel %vm644_vm12, %v1666_v36, %v1675_v21 }
 0x4de   : > { %v1049_v14 = vpop.permute.xlu1 %1048  ;;  %v1053_v17 = vpop.permute.xlu0 %1052  ;;  %v1522_v31 = vpack.c.bf16 %v1087_v15, %v1085_v29  ;;  %v1525_v43 = vpack.c.bf16 %v1086_v33, %v1084_v38  ;;  %v1528_v45 = vpack.c.bf16 %v1127_v34, %v1125_v42  ;;  %v1531_v51 = vpack.c.bf16 %v1126_v44, %v1124_v46 }
 0x4e2   : > { %v1051_v26 = vpop.permute.xlu1 %1050  ;;  %v1153_v27 = vpop.permute.xlu0 %1152 }
 0x4e3   : > { %v1055_v30 = vsel %vm568_vm10, %v1051_v26, %v1053_v17  ;;  %v1054_v32 = vsel %vm568_vm10, %v1049_v14, %v1051_v26 }
 0x4e4   : > { %1350 = vmatprep.subr.bf16.mxu1 %v1055_v30 }
 0x4e5   : > { %1351 = vmatpush1.bf16.msra.mxu1 %v1054_v32 }
 0x4e6   : > { %v1157_v39 = vpop.permute.xlu1 %1156  ;;  %v1684_v41 = vpop.permute.xlu0 %1683  ;;  %1523 = vmatprep.subr.msk.bf16.mxu1 %vm1973_vm13, %v1522_v31 }
 0x4e7   : > { %v1686_v47 = vunpack.i.h.bf16 %v1684_v41  ;;  %v1685_v48 = vunpack.i.l.bf16 %v1684_v41 }
 0x4e9   : > { %1526 = vmatpush1.bf16.msk.msra.mxu1 %vm1985_vm15, %v1525_v43  ;;  %v1191_v55 = vsel %vm710_vm0, %v1685_v48, %v1686_v47 }
 0x4ea   : > { %v1679_v49 = vpop.permute.xlu1 %1678  ;;  %v1694_v50 = vpop.permute.xlu0 %1693  ;;  %1529 = vmatprep.subr.msk.bf16.mxu1 %vm1899_vm5, %v1528_v45 }
 0x4eb   : > { %v1681_v52 = vunpack.i.h.bf16 %v1679_v49  ;;  %v1680_v53 = vunpack.i.l.bf16 %v1679_v49  ;;  %v1696_v63 = vunpack.i.h.bf16 %v1694_v50  ;;  %v1695_v0 = vunpack.i.l.bf16 %v1694_v50 }
 0x4ed   : > { %v1189_v54 = vsel %vm710_vm0, %v1680_v53, %v1681_v52  ;;  %1532 = vmatpush1.bf16.msk.msra.mxu1 %vm1907_vm7, %v1531_v51  ;;  %v1229_v4 = vsel %vm751_vm4, %v1695_v0, %v1696_v63 }
 0x4ee   : > { %v1689_v56 = vpop.permute.xlu1 %1688  ;;  %v1155_v57 = vpop.permute.xlu0 %1154  ;;  %v1534_v62 = vpack.c.bf16 %v1191_v55, %v1189_v54 }
 0x4ef   : > { %v1691_v58 = vunpack.i.h.bf16 %v1689_v56  ;;  %v1690_v59 = vunpack.i.l.bf16 %v1689_v56  ;;  %v1159_v60 = vsel %vm679_vm2, %v1155_v57, %v1157_v39  ;;  %v1158_v61 = vsel %vm679_vm2, %v1153_v27, %v1155_v57 }
 0x4f0   : > { %1356 = vmatprep.subr.bf16.mxu1 %v1159_v60 }
 0x4f1   : > { %v1188_v1 = vsel %vm710_vm0, %v1690_v59, %v1680_v53  ;;  %v1190_v2 = vsel %vm710_vm0, %v1691_v58, %v1685_v48  ;;  %1357 = vmatpush1.bf16.msra.mxu1 %v1158_v61 }
 0x4f2   : > { %v1537_v3 = vpack.c.bf16 %v1190_v2, %v1188_v1  ;;  %v1699_v5 = vpop.permute.xlu1 %1698  ;;  %v1704_v6 = vpop.permute.xlu0 %1703  ;;  %1535 = vmatprep.subr.msk.bf16.mxu1 %vm1973_vm13, %v1534_v62 }
 0x4f3   : > { %v1701_v7 = vunpack.i.h.bf16 %v1699_v5  ;;  %v1700_v8 = vunpack.i.l.bf16 %v1699_v5  ;;  %v1706_v9 = vunpack.i.h.bf16 %v1704_v6  ;;  %v1705_v10 = vunpack.i.l.bf16 %v1704_v6 }
 0x4f5   : > { %v1231_v11 = vsel %vm751_vm4, %v1700_v8, %v1701_v7  ;;  %v1230_v12 = vsel %vm751_vm4, %v1706_v9, %v1700_v8  ;;  %v1228_v13 = vsel %vm751_vm4, %v1705_v10, %v1695_v0  ;;  %1538 = vmatpush1.bf16.msk.msra.mxu1 %vm1985_vm15, %v1537_v3 }
 0x4f6   : > { %v1540_v14 = vpack.c.bf16 %v1231_v11, %v1229_v4  ;;  %v1543_v17 = vpack.c.bf16 %v1230_v12, %v1228_v13  ;;  %v1257_v18 = vpop.permute.xlu1 %1256  ;;  %v1261_v19 = vpop.permute.xlu0 %1260 }
 0x4f8   : > { %1541 = vmatprep.subr.msk.bf16.mxu1 %vm1899_vm5, %v1540_v14 }
 0x4f9   : > { %1544 = vmatpush1.bf16.msk.msra.mxu1 %vm1907_vm7, %v1543_v17 }
 0x4fa   : > { %v1259_v15 = vpop.permute.xlu1 %1258  ;;  %v1709_v20 = vpop.permute.xlu0 %1708 }
 0x4fb   : > { %v1263_v21 = vsel %vm786_vm6, %v1259_v15, %v1261_v19  ;;  %v1262_v16 = vsel %vm786_vm6, %v1257_v18, %v1259_v15  ;;  %v1711_v23 = vunpack.i.h.bf16 %v1709_v20  ;;  %v1710_v24 = vunpack.i.l.bf16 %v1709_v20 }
 0x4fc   : > { %1362 = vmatprep.subr.bf16.mxu1 %v1263_v21 }
 0x4fd   : > { %1363 = vmatpush1.bf16.msra.mxu1 %v1262_v16  ;;  %v1293_v40 = vsel %vm817_vm11, %v1710_v24, %v1711_v23 }
 0x4fe   : > { %v1714_v26 = vpop.permute.xlu1 %1713  ;;  %v1719_v27 = vpop.permute.xlu0 %1718 }
 0x4ff   : > { %v1716_v28 = vunpack.i.h.bf16 %v1714_v26  ;;  %v1715_v29 = vunpack.i.l.bf16 %v1714_v26  ;;  %v1721_v35 = vunpack.i.h.bf16 %v1719_v27  ;;  %v1720_v30 = vunpack.i.l.bf16 %v1719_v27 }
 0x501   : > { %v1295_v32 = vsel %vm817_vm11, %v1715_v29, %v1716_v28  ;;  %v1294_v33 = vsel %vm817_vm11, %v1721_v35, %v1715_v29  ;;  %v1292_v31 = vsel %vm817_vm11, %v1720_v30, %v1710_v24 }
 0x502   : > { %v1546_v34 = vpack.c.bf16 %v1295_v32, %v1293_v40  ;;  %v1549_v36 = vpack.c.bf16 %v1294_v33, %v1292_v31 }
 0x504   : > { %1547 = vmatprep.subr.msk.bf16.mxu1 %vm1973_vm13, %v1546_v34 }
 0x505   : > { %1550 = vmatpush1.bf16.msk.msra.mxu1 %vm1985_vm15, %v1549_v36 }
 0x508   : > { %1381 = vmatmul.mubr.bf16.vlgmr.msra.gmra.mrb[0].mxu1 %v1725_v37 }
 0x50f   : > { %v1329_v38 = vpop.permute.xlu1 %1328  ;;  %v1334_v43 = vpop.permute.xlu0 %1333 }
 0x5db   : > { %v1382_v39 = vpop.f32.mrb[0].mxu1 }
 0x5dc   : > { %v1383_v41 = vadd.f32 %v1382_v39, %v1329_v38  ;;  %v1384_v42 = vpop.f32.mrb[1].mxu1 }
 0x5dd   : > { %v1385_v22 = vadd.f32 %v1384_v42, %v1329_v38  ;;  %v1386_v44 = vpop.f32.mrb[2].mxu1 }
 0x5de   : > { %1391 = vst [vmem:[%s319_s25] sm:$0xff] %v1383_v41  ;;  %v1387_v45 = vadd.f32 %v1386_v44, %v1334_v43  ;;  %v1388_v46 = vpop.f32.mrb[3].mxu1 }
 0x5df   : > { %1392 = vst [vmem:[%s319_s25 + $0x8] sm:$0xff] %v1385_v22  ;;  %v1389_v47 = vadd.f32 %v1388_v46, %v1334_v43 }
 0x5e0   : > { %1393 = vst [vmem:[%s319_s25 + $0x10] sm:$0xff] %v1387_v45 }
 0x5e1   : > { %1394 = vst [vmem:[%s319_s25 + $0x18] sm:$0xff] %v1389_v47 }
 0x5e2 PF: > { %s18_s27 = sadd.s32 1, %s1742_s27  }
 0x5e3   : > { %p15_p4 = scmp.ge.s32.totalorder %s18_s27, 4  }
 0x5e5   :  { %17 = sbr.rel (!%p15_p4) target bundleno = 1 (0x1), region = 85 }

</bundles_post_ra>
